<compile_context>
chip_gen: v6e
topology: v6e:2x2x1
jax: 0.10.0
libtpu: 0.0.40
codegen_flags: <defaults>
</compile_context>

<pallas_src>
import functools

import jax
import jax.numpy as jnp
from jax.experimental import pallas as pl
from jax.experimental.pallas import tpu as pltpu


# ---------------------------------------------------------------------------
# small helpers
# ---------------------------------------------------------------------------
def _round_up(x, m):
    return -(-x // m) * m


def _pick_tile(dim, cap, step):
    """Largest multiple of `step` <= cap dividing `dim` (assumes dim % step == 0)."""
    if dim <= cap:
        return dim
    t = (cap // step) * step
    while t >= step:
        if dim % t == 0:
            return t
        t -= step
    return step


def _pick_tn(n):
    if n % 256 == 0:
        return 256
    if n % 128 == 0:
        return 128
    return n


# ---------------------------------------------------------------------------
# Pallas kernels
# ---------------------------------------------------------------------------
def _mm_kernel(a_ref, w_ref, b_ref, o_ref, acc_ref, *, relu, k_steps):
    k = pl.program_id(2)

    @pl.when(k == 0)
    def _():
        acc_ref[...] = jnp.zeros_like(acc_ref)

    acc_ref[...] += jnp.dot(a_ref[...], w_ref[...],
                            preferred_element_type=jnp.float32)

    @pl.when(k == k_steps - 1)
    def _():
        out = acc_ref[...] + b_ref[...]
        if relu:
            out = jnp.maximum(out, 0.0)
        o_ref[...] = out.astype(o_ref.dtype)


def _mm_res_kernel(a_ref, w_ref, b_ref, r_ref, o_ref, acc_ref, *, relu, k_steps):
    k = pl.program_id(2)

    @pl.when(k == 0)
    def _():
        acc_ref[...] = jnp.zeros_like(acc_ref)

    acc_ref[...] += jnp.dot(a_ref[...], w_ref[...],
                            preferred_element_type=jnp.float32)

    @pl.when(k == k_steps - 1)
    def _():
        out = acc_ref[...] + b_ref[...] + r_ref[...].astype(jnp.float32)
        if relu:
            out = jnp.maximum(out, 0.0)
        o_ref[...] = out.astype(o_ref.dtype)


def _conv3x3_kernel(x_ref, w_ref, b_ref, o_ref, *, wp, cin, relu):
    # x_ref: (1, rows_in, cin)  flattened zero-padded image (bf16), resident
    # w_ref: (9*cin, tn) bf16 ; b_ref: (1, tn) f32 ; o_ref: (1, tr, tn) bf16
    # Accumulator tile is capped (tr*tn <= 16K elems, 64 KiB f32) so it lives
    # in vregs without spilling across the 9 taps.
    tr = o_ref.shape[1]
    tn = o_ref.shape[2]
    base = pl.multiple_of(pl.program_id(2) * tr, 16)
    acc = jnp.zeros((tr, tn), jnp.float32)
    for t in range(9):
        i, j = divmod(t, 3)
        a = x_ref[0, pl.ds(base + i * wp + j, tr), :]        # row-shifted tap
        wt = w_ref[pl.ds(t * cin, cin), :]
        acc = acc + jnp.dot(a, wt, preferred_element_type=jnp.float32)
    acc = acc + b_ref[...]
    if relu:
        acc = jnp.maximum(acc, 0.0)
    o_ref[0] = acc.astype(o_ref.dtype)


def _maxpool_kernel(x_ref, o_ref):
    # x_ref: (1, hp/2, 2, wp/2, 2*C) phase-folded padded input
    # o_ref: (1, oh, ow, C)
    oh, ow, c = o_ref.shape[1], o_ref.shape[2], o_ref.shape[3]
    res = None
    for dy, p in ((0, 0), (0, 1), (1, 0)):        # input rows 2y, 2y+1, 2y+2
        for dx, q in ((0, 0), (0, 1), (1, 0)):    # input cols 2x, 2x+1, 2x+2
            tap = x_ref[0, pl.ds(dy, oh), p, pl.ds(dx, ow), pl.ds(q * c, c)]
            res = tap if res is None else jnp.maximum(res, tap)
    o_ref[0] = res


# ---------------------------------------------------------------------------
# Pallas wrappers
# ---------------------------------------------------------------------------
def matmul_bias_act(a, w, b, residual=None, relu=True):
    """(M,K)@(K,N) + bias [+ residual], optional ReLU.  bf16 in, f32 acc, bf16 out."""
    M, K = a.shape
    N = w.shape[1]
    Mp = _round_up(M, 16)                               # bf16 sublane packing
    Kp = K if K % 128 == 0 else _round_up(K, 16)        # e.g. stem 147 -> 160
    if Mp != M:
        a = jnp.pad(a, ((0, Mp - M), (0, 0)))
        if residual is not None:
            residual = jnp.pad(residual, ((0, Mp - M), (0, 0)))
    if Kp != K:
        a = jnp.pad(a, ((0, 0), (0, Kp - K)))
        w = jnp.pad(w, ((0, Kp - K), (0, 0)))

    tn = _pick_tn(N)
    if Mp <= 64:
        # tiny-M late layers: keep tm=Mp but tile N/K so the weight stream is
        # software-pipelined across grid steps (it dominates at small batch).
        tm = Mp
        tk_cap = 512
    else:
        tm = _pick_tile(Mp, 512, 16)
        tk_cap = 1024
    tk = _pick_tile(Kp, tk_cap, 128) if Kp % 128 == 0 else Kp
    # Guarantee a "parallel" grid axis with >= 2 steps (v7x has 2 TensorCores)
    # and so weight/activation DMAs overlap with the MXU.
    if Mp // tm == 1 and N // tn == 1:
        if tn % 256 == 0:
            tn //= 2
        elif Mp >= 32:
            tm = _pick_tile(Mp, Mp // 2, 16)
    k_steps = Kp // tk
    grid = (Mp // tm, N // tn, k_steps)

    a_spec = pl.BlockSpec((tm, tk), lambda i, j, k: (i, k))
    w_spec = pl.BlockSpec((tk, tn), lambda i, j, k: (k, j))
    b_spec = pl.BlockSpec((1, tn), lambda i, j, k: (0, j))
    o_spec = pl.BlockSpec((tm, tn), lambda i, j, k: (i, j))
    scratch = [pltpu.VMEM((tm, tn), jnp.float32)]
    cp = pltpu.CompilerParams(
        dimension_semantics=("parallel", "parallel", "arbitrary"))
    out_shape = jax.ShapeDtypeStruct((Mp, N), jnp.bfloat16)
    b2 = b.reshape(1, N)

    if residual is None:
        out = pl.pallas_call(
            functools.partial(_mm_kernel, relu=relu, k_steps=k_steps),
            out_shape=out_shape, grid=grid,
            in_specs=[a_spec, w_spec, b_spec], out_specs=o_spec,
            scratch_shapes=scratch, compiler_params=cp,
        )(a, w, b2)
    else:
        r_spec = pl.BlockSpec((tm, tn), lambda i, j, k: (i, j))
        out = pl.pallas_call(
            functools.partial(_mm_res_kernel, relu=relu, k_steps=k_steps),
            out_shape=out_shape, grid=grid,
            in_specs=[a_spec, w_spec, b_spec, r_spec], out_specs=o_spec,
            scratch_shapes=scratch, compiler_params=cp,
        )(a, w, b2, residual)
    return out[:M] if Mp != M else out


def conv1x1_bn(x, params, stride=1, relu=True, residual=None):
    """1x1 conv + folded BN [+ residual] [+ ReLU]."""
    w2d, b = params
    if stride != 1:
        x = x[:, ::stride, ::stride, :]
    Nb, oh, ow, cin = x.shape
    a = x.reshape(Nb * oh * ow, cin)
    r2 = None if residual is None else residual.reshape(Nb * oh * ow, -1)
    y = matmul_bias_act(a, w2d, b, residual=r2, relu=relu)
    return y.reshape(Nb, oh, ow, -1)


def conv3x3_bn(x, params, relu=True):
    """3x3 conv, stride 1, padding=1 + folded BN [+ ReLU].

    The 9 taps are accumulated inside the kernel as row-shifted dots over the
    flattened zero-padded image (no im2col blow-up in HBM).  Weight block is
    kept resident across the batch/row grid axes."""
    w2d, b = params
    Nb, H, W, cin = x.shape
    cout = w2d.shape[1]
    wp = W + 2
    nr = H * wp
    nrp = _round_up(nr, 16)
    rows_needed = nrp + 2 * wp + 2             # deepest flat input row touched + 1
    hp = max(-(-rows_needed // wp), H + 2)
    xp = jnp.pad(x, ((0, 0), (1, hp - H - 1), (1, 1), (0, 0)))
    xf = xp.reshape(Nb, hp * wp, cin)          # free reshape

    tn = _pick_tn(cout)
    tr_cap = max(16, ((16384 // tn) // 16) * 16)   # f32 acc tile <= 64 KiB
    tr = _pick_tile(nrp, tr_cap, 16)
    grid = (cout // tn, Nb, nrp // tr)             # weight-resident ordering
    out = pl.pallas_call(
        functools.partial(_conv3x3_kernel, wp=wp, cin=cin, relu=relu),
        out_shape=jax.ShapeDtypeStruct((Nb, nrp, cout), jnp.bfloat16),
        grid=grid,
        in_specs=[pl.BlockSpec((1, hp * wp, cin), lambda c, n, r: (n, 0, 0)),
                  pl.BlockSpec((9 * cin, tn), lambda c, n, r: (0, c)),
                  pl.BlockSpec((1, tn), lambda c, n, r: (0, c))],
        out_specs=pl.BlockSpec((1, tr, tn), lambda c, n, r: (n, r, c)),
        compiler_params=pltpu.CompilerParams(
            dimension_semantics=("parallel", "parallel", "parallel")),
    )(xf, w2d, b.reshape(1, cout))
    # Drop the 2 pad columns / bottom pad rows (one fused XLA slice+reshape).
    z = out[:, :nr, :].reshape(Nb, H, wp, cout)[:, :, :W, :]
    return z


def conv3x3_s2_bn(x, params, relu=True):
    """3x3 conv, stride 2, padding=1 + folded BN [+ ReLU].

    Only used by the first block of layer2/3/4 (smallest spatial sizes):
    tiny im2col + pipelined matmul, so no wasted frame rows/cols."""
    w2d, b = params
    Nb, H, W, cin = x.shape
    oh = (H - 1) // 2 + 1
    ow = (W - 1) // 2 + 1
    xp = jnp.pad(x, ((0, 0), (1, 1), (1, 1), (0, 0)))
    cols = []
    for i in range(3):
        for j in range(3):
            cols.append(xp[:, i:i + 2 * (oh - 1) + 1:2,
                           j:j + 2 * (ow - 1) + 1:2, :])
    patches = jnp.concatenate(cols, axis=-1).reshape(Nb * oh * ow, 9 * cin)
    y = matmul_bias_act(patches, w2d, b, relu=relu)
    return y.reshape(Nb, oh, ow, -1)


def conv7x7_s2_bn(x, params, relu=True):
    """Stem conv: 7x7 stride 2 pad 3 + folded BN + ReLU (small im2col, Cin=3)."""
    w2d, b = params
    Nb, H, W, cin = x.shape
    kh = kw = 7
    stride, pad = 2, 3
    oh = (H + 2 * pad - kh) // stride + 1
    ow = (W + 2 * pad - kw) // stride + 1
    xp = jnp.pad(x, ((0, 0), (pad, pad), (pad, pad), (0, 0)))
    cols = []
    for i in range(kh):
        for j in range(kw):
            cols.append(xp[:, i:i + stride * oh:stride, j:j + stride * ow:stride, :])
    patches = jnp.concatenate(cols, axis=-1).reshape(Nb * oh * ow, kh * kw * cin)
    y = matmul_bias_act(patches, w2d, b, relu=relu)
    return y.reshape(Nb, oh, ow, -1)


def maxpool_3x3_s2(x):
    """MaxPool2d(kernel_size=3, stride=2, padding=1), NHWC bf16."""
    Nb, H, W, C = x.shape
    oh = (H - 1) // 2 + 1
    ow = (W - 1) // 2 + 1
    pad_b = 1 + (H % 2)            # make padded height/width even
    pad_r = 1 + (W % 2)
    neg = float(jnp.finfo(x.dtype).min)
    xp = jnp.pad(x, ((0, 0), (1, pad_b), (1, pad_r), (0, 0)), constant_values=neg)
    hp, wp = H + 1 + pad_b, W + 1 + pad_r
    xf = xp.reshape(Nb, hp // 2, 2, wp // 2, 2 * C)    # free phase-fold reshape
    return pl.pallas_call(
        _maxpool_kernel,
        out_shape=jax.ShapeDtypeStruct((Nb, oh, ow, C), x.dtype),
        grid=(Nb,),
        in_specs=[pl.BlockSpec((1, hp // 2, 2, wp // 2, 2 * C),
                               lambda n: (n, 0, 0, 0, 0))],
        out_specs=pl.BlockSpec((1, oh, ow, C), lambda n: (n, 0, 0, 0)),
        compiler_params=pltpu.CompilerParams(dimension_semantics=("parallel",)),
    )(xf)


# ---------------------------------------------------------------------------
# Parameters (deterministic synthetic init; BN folded into conv weight/bias)
# ---------------------------------------------------------------------------
def make_conv_bn(key, kh, kw, cin, cout):
    k1, k2 = jax.random.split(key)
    w = jax.random.normal(k1, (kh, kw, cin, cout), jnp.float32) * (2.0 / (kh * kw * cin)) ** 0.5
    gamma = jnp.ones((cout,), jnp.float32)
    beta = jax.random.normal(k2, (cout,), jnp.float32) * 0.01
    mean = jnp.zeros((cout,), jnp.float32)
    var = jnp.ones((cout,), jnp.float32)
    scale = gamma * jax.lax.rsqrt(var + 1e-5)
    w_folded = (w * scale).reshape(kh * kw * cin, cout).astype(jnp.bfloat16)
    b_folded = (beta - mean * scale).astype(jnp.float32)
    return w_folded, b_folded


def make_layer(key, cin, planes, blocks, stride):
    layer = []
    for i in range(blocks):
        key, ka, kb, kc, kd = jax.random.split(key, 5)
        s = stride if i == 0 else 1
        in_ch = cin if i == 0 else planes * 4
        block = {
            "c1": make_conv_bn(ka, 1, 1, in_ch, planes),
            "c2": make_conv_bn(kb, 3, 3, planes, planes),
            "c3": make_conv_bn(kc, 1, 1, planes, planes * 4),
        }
        if i == 0:
            block["down"] = make_conv_bn(kd, 1, 1, cin, planes * 4)
        layer.append((block, s))
    return layer, key


def make_resnet50_params(key):
    key, k1 = jax.random.split(key)
    params = {"conv1": make_conv_bn(k1, 7, 7, 3, 64)}
    params["layer1"], key = make_layer(key, 64, 64, 3, 1)     # stage1_img tail
    params["layer2"], key = make_layer(key, 256, 128, 4, 2)   # stage2_img
    params["layer3"], key = make_layer(key, 512, 256, 6, 2)   # stage3_img
    params["layer4"], key = make_layer(key, 1024, 512, 3, 2)  # stage4_img
    return params


# ---------------------------------------------------------------------------
# Forward pass (eval mode): x5 = stage4(stage3(stage2(stage1(x))))
# ---------------------------------------------------------------------------
def bottleneck(x, p, stride):
    identity = x
    out = conv1x1_bn(x, p["c1"], 1, relu=True)
    if stride == 1:
        out = conv3x3_bn(out, p["c2"], relu=True)
    else:
        out = conv3x3_s2_bn(out, p["c2"], relu=True)
    if "down" in p:
        identity = conv1x1_bn(x, p["down"], stride, relu=False)
    # conv3 + BN, add identity, ReLU — residual add & ReLU fused in the kernel
    out = conv1x1_bn(out, p["c3"], 1, relu=True, residual=identity)
    return out


def resnet_swap_2loss_add_forward(x_nchw, params):
    x = jnp.transpose(x_nchw, (0, 2, 3, 1)).astype(jnp.bfloat16)   # NCHW -> NHWC
    # stage1_img = conv1 + bn1 + relu + maxpool + layer1
    x = conv7x7_s2_bn(x, params["conv1"], relu=True)
    x = maxpool_3x3_s2(x)
    for block, s in params["layer1"]:
        x = bottleneck(x, block, s)
    # stage2_img = layer2
    for block, s in params["layer2"]:
        x = bottleneck(x, block, s)
    # stage3_img = layer3
    for block, s in params["layer3"]:
        x = bottleneck(x, block, s)
    # stage4_img = layer4
    for block, s in params["layer4"]:
        x = bottleneck(x, block, s)
    return jnp.transpose(x, (0, 3, 1, 2)).astype(jnp.float32)      # NHWC -> NCHW (x5)


if __name__ == "__main__":
    key = jax.random.PRNGKey(0)
    pkey, xkey = jax.random.split(key)
    params = make_resnet50_params(pkey)
    # Small-but-consistent input: batch=2, 3 channels, 64x64 spatial
    x = jax.random.normal(xkey, (2, 3, 64, 64), jnp.float32)
    x5 = resnet_swap_2loss_add_forward(x, params)
    x5 = jax.block_until_ready(x5)
    assert x5.shape == (2, 2048, 2, 2), x5.shape
    assert bool(jnp.all(jnp.isfinite(x5)))
    print("KERNEL_OK")
</pallas_src>

<mosaic_0001>
module attributes {stable_mosaic.version = 11 : i64} {
  func.func @_mm_kernel(%arg0: i32, %arg1: i32, %arg2: i32, %arg3: memref<512x160xbf16, #tpu.memory_space<vmem>>, %arg4: memref<160x64xbf16, #tpu.memory_space<vmem>>, %arg5: memref<1x64xf32, #tpu.memory_space<vmem>>, %arg6: memref<512x64xbf16, #tpu.memory_space<vmem>>, %arg7: memref<512x64xf32, #tpu.memory_space<vmem>>) attributes {dimension_semantics = [#tpu.dimension_semantics<parallel>, #tpu.dimension_semantics<parallel>, #tpu.dimension_semantics<arbitrary>], iteration_bounds = array<i64: 4, 1, 1>, scalar_prefetch = 0 : i64, scratch_operands = 1 : i64, tpu.core_type = #tpu.core_type<tc>, window_params = [{transform_indices = @transform_0, window_bounds = array<i64: 512, 160>}, {transform_indices = @transform_1, window_bounds = array<i64: 160, 64>}, {transform_indices = @transform_2, window_bounds = array<i64: 1, 64>}, {transform_indices = @transform_3, window_bounds = array<i64: 512, 64>}]} {
    %c0_i32 = arith.constant 0 : i32
    %0 = arith.cmpi eq, %arg2, %c0_i32 : i32
    %1 = arith.extui %0 : i1 to i32
    %c0_i32_0 = arith.constant 0 : i32
    %2 = arith.cmpi ne, %1, %c0_i32_0 : i32
    scf.if %2 {
      %cst_10 = arith.constant 0.000000e+00 : f32
      %12 = vector.broadcast %cst_10 : f32 to vector<512x64xf32>
      %c0_11 = arith.constant 0 : index
      %c0_12 = arith.constant 0 : index
      %13 = vector.load %arg7[%c0_11, %c0_12] : memref<512x64xf32, #tpu.memory_space<vmem>>, vector<512x64xf32>
      tpu.vector_store %arg7[%c0_11, %c0_12], %12 {strides = array<i32>} : memref<512x64xf32, #tpu.memory_space<vmem>>, vector<512x64xf32>,
    } else {
    }
    %c0 = arith.constant 0 : index
    %c0_1 = arith.constant 0 : index
    %3 = vector.load %arg7[%c0, %c0_1] : memref<512x64xf32, #tpu.memory_space<vmem>>, vector<512x64xf32>
    %c0_2 = arith.constant 0 : index
    %c0_3 = arith.constant 0 : index
    %4 = vector.load %arg3[%c0_2, %c0_3] : memref<512x160xbf16, #tpu.memory_space<vmem>>, vector<512x160xbf16>
    %c0_4 = arith.constant 0 : index
    %c0_5 = arith.constant 0 : index
    %5 = vector.load %arg4[%c0_4, %c0_5] : memref<160x64xbf16, #tpu.memory_space<vmem>>, vector<160x64xbf16>
    %cst = arith.constant dense<0.000000e+00> : vector<512x64xf32>
    %6 = tpu.matmul %4, %5, %cst {dimension_numbers = #tpu.dot_dimension_numbers<[1], [0], [0], [1], [0, 0, 1, 1], [], []>} : vector<512x160xbf16>, vector<160x64xbf16>, vector<512x64xf32> -> vector<512x64xf32>
    %7 = arith.addf %3, %6 : vector<512x64xf32>
    %c0_6 = arith.constant 0 : index
    %c0_7 = arith.constant 0 : index
    %8 = vector.load %arg7[%c0_6, %c0_7] : memref<512x64xf32, #tpu.memory_space<vmem>>, vector<512x64xf32>
    tpu.vector_store %arg7[%c0_6, %c0_7], %7 {strides = array<i32>} : memref<512x64xf32, #tpu.memory_space<vmem>>, vector<512x64xf32>,
    %c0_i32_8 = arith.constant 0 : i32
    %9 = arith.cmpi eq, %arg2, %c0_i32_8 : i32
    %10 = arith.extui %9 : i1 to i32
    %c0_i32_9 = arith.constant 0 : i32
    %11 = arith.cmpi ne, %10, %c0_i32_9 : i32
    scf.if %11 {
      %c0_10 = arith.constant 0 : index
      %c0_11 = arith.constant 0 : index
      %12 = vector.load %arg7[%c0_10, %c0_11] : memref<512x64xf32, #tpu.memory_space<vmem>>, vector<512x64xf32>
      %c0_12 = arith.constant 0 : index
      %c0_13 = arith.constant 0 : index
      %13 = vector.load %arg5[%c0_12, %c0_13] : memref<1x64xf32, #tpu.memory_space<vmem>>, vector<1x64xf32>
      %14 = vector.broadcast %13 : vector<1x64xf32> to vector<512x64xf32>
      %15 = arith.addf %12, %14 : vector<512x64xf32>
      %cst_14 = arith.constant 0.000000e+00 : f32
      %16 = vector.broadcast %cst_14 : f32 to vector<512x64xf32>
      %17 = arith.maximumf %15, %16 : vector<512x64xf32>
      %18 = arith.truncf %17 : vector<512x64xf32> to vector<512x64xbf16>
      %c0_15 = arith.constant 0 : index
      %c0_16 = arith.constant 0 : index
      %19 = vector.load %arg6[%c0_15, %c0_16] : memref<512x64xbf16, #tpu.memory_space<vmem>>, vector<512x64xbf16>
      tpu.vector_store %arg6[%c0_15, %c0_16], %18 {strides = array<i32>} : memref<512x64xbf16, #tpu.memory_space<vmem>>, vector<512x64xbf16>,
    } else {
    }
    return
  }
  func.func @transform_0(%arg0: i32, %arg1: i32, %arg2: i32) -> (i32, i32) {
    %c0_i32 = arith.constant 0 : i32
    return %arg0, %arg2 : i32, i32
  }
  func.func @transform_1(%arg0: i32, %arg1: i32, %arg2: i32) -> (i32, i32) {
    %c0_i32 = arith.constant 0 : i32
    return %arg2, %arg1 : i32, i32
  }
  func.func @transform_2(%arg0: i32, %arg1: i32, %arg2: i32) -> (i32, i32) {
    %c0_i32 = arith.constant 0 : i32
    %c0_i32_0 = arith.constant 0 : i32
    return %c0_i32, %arg1 : i32, i32
  }
  func.func @transform_3(%arg0: i32, %arg1: i32, %arg2: i32) -> (i32, i32) {
    %c0_i32 = arith.constant 0 : i32
    return %arg0, %arg1 : i32, i32
  }
}

</mosaic_0001>

<bundles_post_ra>
// kernel: tpu_custom_call.1
= control target key start
LH: loop header
LB: loop body
LE: loop exit
PB: predicated region body
PF: predicated region fallthrough
CT: control target
= control target key end

     0   :  { %s2434_s12 = smov 0   ;;  %s2436_s13 = smov 0   ;;  %s3002_s0 = inlined_call_operand.vmem [shape: bf16[2048,160], index: 0, kind: input, shape index: {}]   ;;  %s3003_s1 = inlined_call_operand.vmem [shape: bf16[160,64], index: 1, kind: input, shape index: {}]   ;;  %s3004_s2 = inlined_call_operand.vmem [shape: f32[1,64], index: 2, kind: input, shape index: {}]   ;;  %s3005_s3 = inlined_call_operand.vmem [shape: bf16[2048,64], index: 3, kind: output, shape index: {}]  }
   0x1   :  { %s2438_s14 = smov 0  }
   0x2 LB: > { %s32_s15 = sadd.s32 1, %s2406_s13  ;;  %p1991_p0 = scmp.ge.s32.totalorder %s2410_s14, 1  ;;  %s2410_s14 = sphi %s2438_s14, %s13_s14   ;;  %s2406_s13 = sphi %s2436_s13, %s3007_s13   ;;  %s2402_s12 = sphi %s2434_s12, %s3006_s12  }
   0x3   : > { %p34_p1 = scmp.ge.s32.totalorder %s32_s15, 4  ;;  %p191_p2 = scmp.lt.s32.totalorder %s2410_s14, 5 }
   0x5   : > { %s3009_s15 = smov (%p34_p1, %s32_s15), 0  ;;  %p192_p3 = pnand %p1991_p0, %p191_p2 }
   0x6   : > { %s1992_s18 = sshll.u32 (!%p192_p3), %s2402_s12, 6 }
   0x7   : > { %195 = sbr.rel (%p192_p3) target bundleno = 388 (0x184), region = 32  ;;  %p236_p4 = scmp.lt.s32.totalorder (!%p192_p3), %s1992_s18, 255 }
   0xc   : > { %v2281_v0 = vld [vmem:[%s3003_s1 + $0x38] sm:$0xff]   ;;  %v2412_v1 = vmov 0   ;;  %v2282_v2 = vld [vmem:[%s3003_s1 + $0x30] sm:$0xff]   ;;  %s3011_s18 = smov (!%p236_p4, %s1992_s18), 255  ;;  %v2283_v3 = vld [vmem:[%s3003_s1 + $0x28] sm:$0xff]   ;;  %vm833_vm0 = vcmask 261120  }
   0xd   : > { %930 = vmatprep.subr.bf16.mxu0 %v2412_v1  ;;  %2235 = vmatprep.subr.bf16.mxu1 %v2412_v1  ;;  %s2170_s23 = sshll.u32 %s3011_s18, 3  ;;  %v2284_v4 = vld [vmem:[%s3003_s1 + $0x20] sm:$0xff]   ;;  %v2285_v7 = vld [vmem:[%s3003_s1 + $0x18] sm:$0xff]   ;;  %v2286_v8 = vld [vmem:[%s3003_s1 + $0x10] sm:$0xff]   ;;  %vm272_vm1 = vcmask 523264   ;;  %v2413_v14 = vmov 0.0  }
   0xe   : > { %931 = vmatpush1.bf16.msra.mxu0 %v2281_v0  ;;  %2245 = vmatpush1.bf16.msra.mxu1 %v2281_v0  ;;  %s2467_s26 = scalar_lea.vmem %s3002_s0, %s2170_s23  ;;  %v2287_v9 = vld [vmem:[%s3003_s1 + $0x8] sm:$0xff]   ;;  %v2288_v10 = vld [vmem:[%s3003_s1] sm:$0xff]   ;;  %273 = vst.msk [vmem:[#allocation2] sm:$0xff] %vm272_vm1, %v2413_v14  ;;  %274 = vst.msk [vmem:[#allocation2 + $0x8] sm:$0xff] %vm272_vm1, %v2413_v14  ;;  %s1996_s20 = sshll.u32 %s3011_s18, 2  ;;  %vm1806_vm2 = vcmask 519168  }
   0xf   : > { %932 = vmatprep.subr.bf16.mxu0 %v2412_v1  ;;  %2236 = vmatprep.subr.bf16.mxu1 %v2412_v1  ;;  %v2293_v5 = vld [vmem:[%s2467_s26 + $0x4] ss:$8 sps:$4 sm:$0xff]   ;;  %v2497_v13 = vld [vmem:[%s2467_s26] ss:$8 sps:$4 sm:$0xff]   ;;  %275 = vst.msk [vmem:[#allocation2 + $0x10] sm:$0xff] %vm272_vm1, %v2413_v14  ;;  %276 = vst.msk [vmem:[#allocation2 + $0x18] sm:$0xff] %vm272_vm1, %v2413_v14  ;;  %s2738_s23 = scalar_lea.vmem %s3005_s3, %s1996_s20 }
  0x10   : > { %v2296_v6 = vld [vmem:[%s2467_s26 + $0x104] ss:$8 sps:$4 sm:$0xff]   ;;  %2071 = vmatprep.mubr.msk.bf16.mxu0 %vm833_vm0, %v2293_v5  ;;  %277 = vst.msk [vmem:[#allocation2 + $0x20] sm:$0xff] %vm272_vm1, %v2413_v14  ;;  %278 = vst.msk [vmem:[#allocation2 + $0x28] sm:$0xff] %vm272_vm1, %v2413_v14  ;;  %v2294_v15 = vld [vmem:[%s2467_s26 + $0x100] ss:$8 sps:$4 sm:$0xff]  }
  0x11   : > { %2087 = vmatprep.mubr.msk.bf16.mxu1 %vm833_vm0, %v2296_v6  ;;  %v2289_v11 = vld [vmem:[%s3003_s1 + $0x48] sm:$0xff]   ;;  %v2494_v12 = vld [vmem:[%s3003_s1 + $0x40] sm:$0xff]   ;;  %279 = vst.msk [vmem:[#allocation2 + $0x30] sm:$0xff] %vm272_vm1, %v2413_v14  ;;  %280 = vst.msk [vmem:[#allocation2 + $0x38] sm:$0xff] %vm272_vm1, %v2413_v14 }
  0x12   : > { %933 = vmatpush1.bf16.msra.mxu0 %v2282_v2  ;;  %2246 = vmatpush1.bf16.msra.mxu1 %v2282_v2  ;;  %281 = vst.msk [vmem:[#allocation2 + $0x40] sm:$0xff] %vm272_vm1, %v2413_v14  ;;  %282 = vst.msk [vmem:[#allocation2 + $0x48] sm:$0xff] %vm272_vm1, %v2413_v14  ;;  %v2297_v16 = vld [vmem:[%s2467_s26 + $0x14] ss:$8 sps:$4 sm:$0xff]   ;;  %v2301_v18 = vld [vmem:[%s2467_s26 + $0x10] ss:$8 sps:$4 sm:$0xff]  }
  0x13   : > { %934 = vmatprep.subr.bf16.mxu0 %v2412_v1  ;;  %2237 = vmatprep.subr.bf16.mxu1 %v2412_v1  ;;  %283 = vst.msk [vmem:[#allocation2 + $0x50] sm:$0xff] %vm272_vm1, %v2413_v14  ;;  %284 = vst.msk [vmem:[#allocation2 + $0x58] sm:$0xff] %vm272_vm1, %v2413_v14  ;;  %v2299_v17 = vld [vmem:[%s2467_s26 + $0x114] ss:$8 sps:$4 sm:$0xff]   ;;  %v2302_v19 = vld [vmem:[%s2467_s26 + $0x110] ss:$8 sps:$4 sm:$0xff]  }
  0x14   : > { %285 = vst.msk [vmem:[#allocation2 + $0x60] sm:$0xff] %vm272_vm1, %v2413_v14  ;;  %286 = vst.msk [vmem:[#allocation2 + $0x68] sm:$0xff] %vm272_vm1, %v2413_v14  ;;  %v2303_v20 = vld [vmem:[%s2467_s26 + $0x24] ss:$8 sps:$4 sm:$0xff]   ;;  %v2307_v22 = vld [vmem:[%s2467_s26 + $0x20] ss:$8 sps:$4 sm:$0xff]  }
  0x15   : > { %287 = vst.msk [vmem:[#allocation2 + $0x70] sm:$0xff] %vm272_vm1, %v2413_v14  ;;  %288 = vst.msk [vmem:[#allocation2 + $0x78] sm:$0xff] %vm272_vm1, %v2413_v14  ;;  %v2305_v21 = vld [vmem:[%s2467_s26 + $0x124] ss:$8 sps:$4 sm:$0xff]   ;;  %v2308_v23 = vld [vmem:[%s2467_s26 + $0x120] ss:$8 sps:$4 sm:$0xff]  }
  0x16   : > { %935 = vmatpush1.bf16.msra.mxu0 %v2283_v3  ;;  %2247 = vmatpush1.bf16.msra.mxu1 %v2283_v3  ;;  %289 = vst.msk [vmem:[#allocation2 + $0x80] sm:$0xff] %vm272_vm1, %v2413_v14  ;;  %290 = vst.msk [vmem:[#allocation2 + $0x88] sm:$0xff] %vm272_vm1, %v2413_v14  ;;  %v2309_v24 = vld [vmem:[%s2467_s26 + $0x34] ss:$8 sps:$4 sm:$0xff]   ;;  %v2313_v26 = vld [vmem:[%s2467_s26 + $0x30] ss:$8 sps:$4 sm:$0xff]  }
  0x17   : > { %936 = vmatprep.subr.bf16.mxu0 %v2412_v1  ;;  %2238 = vmatprep.subr.bf16.mxu1 %v2412_v1  ;;  %291 = vst.msk [vmem:[#allocation2 + $0x90] sm:$0xff] %vm272_vm1, %v2413_v14  ;;  %292 = vst.msk [vmem:[#allocation2 + $0x98] sm:$0xff] %vm272_vm1, %v2413_v14  ;;  %v2311_v25 = vld [vmem:[%s2467_s26 + $0x134] ss:$8 sps:$4 sm:$0xff]   ;;  %v2314_v27 = vld [vmem:[%s2467_s26 + $0x130] ss:$8 sps:$4 sm:$0xff]  }
  0x18   : > { %293 = vst.msk [vmem:[#allocation2 + $0xa0] sm:$0xff] %vm272_vm1, %v2413_v14  ;;  %294 = vst.msk [vmem:[#allocation2 + $0xa8] sm:$0xff] %vm272_vm1, %v2413_v14  ;;  %v2315_v28 = vld [vmem:[%s2467_s26 + $0x44] ss:$8 sps:$4 sm:$0xff]   ;;  %v2319_v30 = vld [vmem:[%s2467_s26 + $0x40] ss:$8 sps:$4 sm:$0xff]  }
  0x19   : > { %295 = vst.msk [vmem:[#allocation2 + $0xb0] sm:$0xff] %vm272_vm1, %v2413_v14  ;;  %296 = vst.msk [vmem:[#allocation2 + $0xb8] sm:$0xff] %vm272_vm1, %v2413_v14  ;;  %v2317_v29 = vld [vmem:[%s2467_s26 + $0x144] ss:$8 sps:$4 sm:$0xff]   ;;  %v2320_v31 = vld [vmem:[%s2467_s26 + $0x140] ss:$8 sps:$4 sm:$0xff]  }
  0x1a   : > { %937 = vmatpush1.bf16.msra.mxu0 %v2284_v4  ;;  %2248 = vmatpush1.bf16.msra.mxu1 %v2284_v4  ;;  %297 = vst.msk [vmem:[#allocation2 + $0xc0] sm:$0xff] %vm272_vm1, %v2413_v14  ;;  %298 = vst.msk [vmem:[#allocation2 + $0xc8] sm:$0xff] %vm272_vm1, %v2413_v14  ;;  %v2321_v32 = vld [vmem:[%s2467_s26 + $0x54] ss:$8 sps:$4 sm:$0xff]   ;;  %v2325_v34 = vld [vmem:[%s2467_s26 + $0x50] ss:$8 sps:$4 sm:$0xff]  }
  0x1b   : > { %938 = vmatprep.subr.bf16.mxu0 %v2412_v1  ;;  %2239 = vmatprep.subr.bf16.mxu1 %v2412_v1  ;;  %299 = vst.msk [vmem:[#allocation2 + $0xd0] sm:$0xff] %vm272_vm1, %v2413_v14  ;;  %300 = vst.msk [vmem:[#allocation2 + $0xd8] sm:$0xff] %vm272_vm1, %v2413_v14  ;;  %v2323_v33 = vld [vmem:[%s2467_s26 + $0x154] ss:$8 sps:$4 sm:$0xff]   ;;  %v2326_v35 = vld [vmem:[%s2467_s26 + $0x150] ss:$8 sps:$4 sm:$0xff]  }
  0x1c   : > { %301 = vst.msk [vmem:[#allocation2 + $0xe0] sm:$0xff] %vm272_vm1, %v2413_v14  ;;  %302 = vst.msk [vmem:[#allocation2 + $0xe8] sm:$0xff] %vm272_vm1, %v2413_v14  ;;  %v2327_v36 = vld [vmem:[%s2467_s26 + $0x64] ss:$8 sps:$4 sm:$0xff]   ;;  %v2331_v38 = vld [vmem:[%s2467_s26 + $0x60] ss:$8 sps:$4 sm:$0xff]  }
  0x1d   : > { %303 = vst.msk [vmem:[#allocation2 + $0xf0] sm:$0xff] %vm272_vm1, %v2413_v14  ;;  %304 = vst.msk [vmem:[#allocation2 + $0xf8] sm:$0xff] %vm272_vm1, %v2413_v14  ;;  %v2329_v37 = vld [vmem:[%s2467_s26 + $0x164] ss:$8 sps:$4 sm:$0xff]   ;;  %v2332_v39 = vld [vmem:[%s2467_s26 + $0x160] ss:$8 sps:$4 sm:$0xff]  }
  0x1e   : > { %939 = vmatpush1.bf16.msra.mxu0 %v2285_v7  ;;  %2249 = vmatpush1.bf16.msra.mxu1 %v2285_v7  ;;  %305 = vst.msk [vmem:[#allocation2 + $0x100] sm:$0xff] %vm272_vm1, %v2413_v14  ;;  %306 = vst.msk [vmem:[#allocation2 + $0x108] sm:$0xff] %vm272_vm1, %v2413_v14  ;;  %v2333_v40 = vld [vmem:[%s2467_s26 + $0x74] ss:$8 sps:$4 sm:$0xff]   ;;  %v2337_v42 = vld [vmem:[%s2467_s26 + $0x70] ss:$8 sps:$4 sm:$0xff]  }
  0x1f   : > { %940 = vmatprep.subr.bf16.mxu0 %v2412_v1  ;;  %2240 = vmatprep.subr.bf16.mxu1 %v2412_v1  ;;  %307 = vst.msk [vmem:[#allocation2 + $0x110] sm:$0xff] %vm272_vm1, %v2413_v14  ;;  %308 = vst.msk [vmem:[#allocation2 + $0x118] sm:$0xff] %vm272_vm1, %v2413_v14  ;;  %v2335_v41 = vld [vmem:[%s2467_s26 + $0x174] ss:$8 sps:$4 sm:$0xff]   ;;  %v2338_v43 = vld [vmem:[%s2467_s26 + $0x170] ss:$8 sps:$4 sm:$0xff]  }
  0x20   : > { %309 = vst.msk [vmem:[#allocation2 + $0x120] sm:$0xff] %vm272_vm1, %v2413_v14  ;;  %310 = vst.msk [vmem:[#allocation2 + $0x128] sm:$0xff] %vm272_vm1, %v2413_v14  ;;  %v2339_v44 = vld [vmem:[%s2467_s26 + $0x84] ss:$8 sps:$4 sm:$0xff]   ;;  %v2343_v46 = vld [vmem:[%s2467_s26 + $0x80] ss:$8 sps:$4 sm:$0xff]  }
  0x21   : > { %311 = vst.msk [vmem:[#allocation2 + $0x130] sm:$0xff] %vm272_vm1, %v2413_v14  ;;  %312 = vst.msk [vmem:[#allocation2 + $0x138] sm:$0xff] %vm272_vm1, %v2413_v14  ;;  %v2341_v45 = vld [vmem:[%s2467_s26 + $0x184] ss:$8 sps:$4 sm:$0xff]   ;;  %v2344_v47 = vld [vmem:[%s2467_s26 + $0x180] ss:$8 sps:$4 sm:$0xff]  }
  0x22   : > { %941 = vmatpush1.bf16.msra.mxu0 %v2286_v8  ;;  %2250 = vmatpush1.bf16.msra.mxu1 %v2286_v8  ;;  %313 = vst.msk [vmem:[#allocation2 + $0x140] sm:$0xff] %vm272_vm1, %v2413_v14  ;;  %314 = vst.msk [vmem:[#allocation2 + $0x148] sm:$0xff] %vm272_vm1, %v2413_v14  ;;  %v2345_v48 = vld [vmem:[%s2467_s26 + $0x94] ss:$8 sps:$4 sm:$0xff]   ;;  %v2349_v50 = vld [vmem:[%s2467_s26 + $0x90] ss:$8 sps:$4 sm:$0xff]  }
  0x23   : > { %942 = vmatprep.subr.bf16.mxu0 %v2412_v1  ;;  %2241 = vmatprep.subr.bf16.mxu1 %v2412_v1  ;;  %315 = vst.msk [vmem:[#allocation2 + $0x150] sm:$0xff] %vm272_vm1, %v2413_v14  ;;  %316 = vst.msk [vmem:[#allocation2 + $0x158] sm:$0xff] %vm272_vm1, %v2413_v14  ;;  %v2347_v49 = vld [vmem:[%s2467_s26 + $0x194] ss:$8 sps:$4 sm:$0xff]   ;;  %v2350_v51 = vld [vmem:[%s2467_s26 + $0x190] ss:$8 sps:$4 sm:$0xff]  }
  0x24   : > { %317 = vst.msk [vmem:[#allocation2 + $0x160] sm:$0xff] %vm272_vm1, %v2413_v14  ;;  %318 = vst.msk [vmem:[#allocation2 + $0x168] sm:$0xff] %vm272_vm1, %v2413_v14  ;;  %v2351_v52 = vld [vmem:[%s2467_s26 + $0xa4] ss:$8 sps:$4 sm:$0xff]   ;;  %v2355_v54 = vld [vmem:[%s2467_s26 + $0xa0] ss:$8 sps:$4 sm:$0xff]  }
  0x25   : > { %319 = vst.msk [vmem:[#allocation2 + $0x170] sm:$0xff] %vm272_vm1, %v2413_v14  ;;  %320 = vst.msk [vmem:[#allocation2 + $0x178] sm:$0xff] %vm272_vm1, %v2413_v14  ;;  %v2353_v53 = vld [vmem:[%s2467_s26 + $0x1a4] ss:$8 sps:$4 sm:$0xff]   ;;  %v2356_v55 = vld [vmem:[%s2467_s26 + $0x1a0] ss:$8 sps:$4 sm:$0xff]  }
  0x26   : > { %943 = vmatpush1.bf16.msra.mxu0 %v2287_v9  ;;  %2251 = vmatpush1.bf16.msra.mxu1 %v2287_v9  ;;  %321 = vst.msk [vmem:[#allocation2 + $0x180] sm:$0xff] %vm272_vm1, %v2413_v14  ;;  %322 = vst.msk [vmem:[#allocation2 + $0x188] sm:$0xff] %vm272_vm1, %v2413_v14  ;;  %v2357_v56 = vld [vmem:[%s2467_s26 + $0xb4] ss:$8 sps:$4 sm:$0xff]   ;;  %v2361_v58 = vld [vmem:[%s2467_s26 + $0xb0] ss:$8 sps:$4 sm:$0xff]  }
  0x27   : > { %944 = vmatprep.subr.bf16.mxu0 %v2412_v1  ;;  %2242 = vmatprep.subr.bf16.mxu1 %v2412_v1  ;;  %323 = vst.msk [vmem:[#allocation2 + $0x190] sm:$0xff] %vm272_vm1, %v2413_v14  ;;  %324 = vst.msk [vmem:[#allocation2 + $0x198] sm:$0xff] %vm272_vm1, %v2413_v14  ;;  %v2359_v57 = vld [vmem:[%s2467_s26 + $0x1b4] ss:$8 sps:$4 sm:$0xff]   ;;  %v2362_v59 = vld [vmem:[%s2467_s26 + $0x1b0] ss:$8 sps:$4 sm:$0xff]  }
  0x28   : > { %325 = vst.msk [vmem:[#allocation2 + $0x1a0] sm:$0xff] %vm272_vm1, %v2413_v14  ;;  %326 = vst.msk [vmem:[#allocation2 + $0x1a8] sm:$0xff] %vm272_vm1, %v2413_v14  ;;  %v2363_v60 = vld [vmem:[%s2467_s26 + $0xc4] ss:$8 sps:$4 sm:$0xff]   ;;  %v2367_v62 = vld [vmem:[%s2467_s26 + $0xc0] ss:$8 sps:$4 sm:$0xff]  }
  0x29   : > { %327 = vst.msk [vmem:[#allocation2 + $0x1b0] sm:$0xff] %vm272_vm1, %v2413_v14  ;;  %328 = vst.msk [vmem:[#allocation2 + $0x1b8] sm:$0xff] %vm272_vm1, %v2413_v14  ;;  %v2365_v61 = vld [vmem:[%s2467_s26 + $0x1c4] ss:$8 sps:$4 sm:$0xff]   ;;  %v2368_v63 = vld [vmem:[%s2467_s26 + $0x1c0] ss:$8 sps:$4 sm:$0xff]  }
  0x2a   : > { %945 = vmatpush1.bf16.msra.mxu0 %v2288_v10  ;;  %2252 = vmatpush1.bf16.msra.mxu1 %v2288_v10  ;;  %329 = vst.msk [vmem:[#allocation2 + $0x1c0] sm:$0xff] %vm272_vm1, %v2413_v14  ;;  %330 = vst.msk [vmem:[#allocation2 + $0x1c8] sm:$0xff] %vm272_vm1, %v2413_v14  ;;  %v2369_v0 = vld [vmem:[%s2467_s26 + $0xd4] ss:$8 sps:$4 sm:$0xff]   ;;  %v2373_v2 = vld [vmem:[%s2467_s26 + $0xd0] ss:$8 sps:$4 sm:$0xff]  }
  0x2b   : > { %958 = vmatprep.subr.bf16.mxu0 %v2412_v1  ;;  %2243 = vmatprep.subr.bf16.mxu1 %v2412_v1  ;;  %331 = vst.msk [vmem:[#allocation2 + $0x1d0] sm:$0xff] %vm272_vm1, %v2413_v14  ;;  %332 = vst.msk [vmem:[#allocation2 + $0x1d8] sm:$0xff] %vm272_vm1, %v2413_v14  ;;  %v2374_v3 = vld [vmem:[%s2467_s26 + $0x1d0] ss:$8 sps:$4 sm:$0xff]   ;;  %v2375_v4 = vld [vmem:[%s2467_s26 + $0xe4] ss:$8 sps:$4 sm:$0xff]  }
  0x2c   : > { %333 = vst.msk [vmem:[#allocation2 + $0x1e0] sm:$0xff] %vm272_vm1, %v2413_v14  ;;  %334 = vst.msk [vmem:[#allocation2 + $0x1e8] sm:$0xff] %vm272_vm1, %v2413_v14  ;;  %v2377_v5 = vld [vmem:[%s2467_s26 + $0x1e4] ss:$8 sps:$4 sm:$0xff]   ;;  %v2379_v6 = vld [vmem:[%s2467_s26 + $0xe0] ss:$8 sps:$4 sm:$0xff]  }
  0x2d   : > { %335 = vst.msk [vmem:[#allocation2 + $0x1f0] sm:$0xff] %vm272_vm1, %v2413_v14  ;;  %336 = vst.msk [vmem:[#allocation2 + $0x1f8] sm:$0xff] %vm272_vm1, %v2413_v14  ;;  %v2380_v7 = vld [vmem:[%s2467_s26 + $0x1e0] ss:$8 sps:$4 sm:$0xff]   ;;  %v2381_v8 = vld [vmem:[%s2467_s26 + $0xf4] ss:$8 sps:$4 sm:$0xff]  }
  0x2e   : > { %959 = vmatpush2.bf16.msra.mxu0 %v2289_v11  ;;  %2253 = vmatpush2.bf16.msra.mxu1 %v2289_v11  ;;  %v2383_v9 = vld [vmem:[%s2467_s26 + $0x1f4] ss:$8 sps:$4 sm:$0xff]   ;;  %v2385_v10 = vld [vmem:[%s2467_s26 + $0xf0] ss:$8 sps:$4 sm:$0xff]  }
  0x2f   : > { %960 = vmatprep.subr.bf16.mxu0 %v2412_v1  ;;  %2244 = vmatprep.subr.bf16.mxu1 %v2412_v1  ;;  %v2371_v1 = vld [vmem:[%s2467_s26 + $0x1d4] ss:$8 sps:$4 sm:$0xff]   ;;  %v2386_v11 = vld [vmem:[%s2467_s26 + $0x1f0] ss:$8 sps:$4 sm:$0xff]  }
  0x32   : > { %961 = vmatpush2.bf16.msra.mxu0 %v2494_v12  ;;  %2254 = vmatpush2.bf16.msra.mxu1 %v2494_v12  ;;  %v337_v12 = vld [vmem:[#allocation2] sm:$0xff] }
  0x35   : > { %963 = vmatmul.mubr.bf16.vlgmr.msra.gmra.mxu0 %v2497_v13  ;;  %1091 = vmatmul.mubr.bf16.vlgmr.msra.gmra.mxu1 %v2294_v15  ;;  %v369_v13 = vld [vmem:[#allocation2 + $0x100] sm:$0xff] }
  0x36   : > { %2072 = vmatprep.mubr.msk.bf16.mxu0 %vm833_vm0, %v2297_v16  ;;  %2088 = vmatprep.mubr.msk.bf16.mxu1 %vm833_vm0, %v2299_v17 }
  0x3d   : > { %971 = vmatmul.mubr.bf16.gmra.mxu0 %v2301_v18  ;;  %1099 = vmatmul.mubr.bf16.gmra.mxu1 %v2302_v19 }
  0x3e   : > { %2073 = vmatprep.mubr.msk.bf16.mxu0 %vm833_vm0, %v2303_v20  ;;  %2089 = vmatprep.mubr.msk.bf16.mxu1 %vm833_vm0, %v2305_v21  ;;  %v338_v20 = vld [vmem:[#allocation2 + $0x8] sm:$0xff] }
  0x3f   : > { %v370_v21 = vld [vmem:[#allocation2 + $0x108] sm:$0xff] }
  0x45   : > { %979 = vmatmul.mubr.bf16.gmra.mxu0 %v2307_v22  ;;  %1107 = vmatmul.mubr.bf16.gmra.mxu1 %v2308_v23 }
  0x46   : > { %2074 = vmatprep.mubr.msk.bf16.mxu0 %vm833_vm0, %v2309_v24  ;;  %2090 = vmatprep.mubr.msk.bf16.mxu1 %vm833_vm0, %v2311_v25 }
  0x4d   : > { %987 = vmatmul.mubr.bf16.gmra.mxu0 %v2313_v26  ;;  %1115 = vmatmul.mubr.bf16.gmra.mxu1 %v2314_v27 }
  0x4e   : > { %2075 = vmatprep.mubr.msk.bf16.mxu0 %vm833_vm0, %v2315_v28  ;;  %2091 = vmatprep.mubr.msk.bf16.mxu1 %vm833_vm0, %v2317_v29  ;;  %v339_v28 = vld [vmem:[#allocation2 + $0x10] sm:$0xff] }
  0x4f   : > { %v371_v29 = vld [vmem:[#allocation2 + $0x110] sm:$0xff] }
  0x55   : > { %995 = vmatmul.mubr.bf16.gmra.mxu0 %v2319_v30  ;;  %1123 = vmatmul.mubr.bf16.gmra.mxu1 %v2320_v31  ;;  %v2728_v30 = vld [vmem:[%s3004_s2] ss:$0 sm:$0xff] }
  0x56   : > { %2076 = vmatprep.mubr.msk.bf16.mxu0 %vm833_vm0, %v2321_v32  ;;  %2092 = vmatprep.mubr.msk.bf16.mxu1 %vm833_vm0, %v2323_v33 }
  0x5d   : > { %1003 = vmatmul.mubr.bf16.gmra.mxu0 %v2325_v34  ;;  %1131 = vmatmul.mubr.bf16.gmra.mxu1 %v2326_v35  ;;  %v340_v35 = vld [vmem:[#allocation2 + $0x18] sm:$0xff] }
  0x5e   : > { %2077 = vmatprep.mubr.msk.bf16.mxu0 %vm833_vm0, %v2327_v36  ;;  %2093 = vmatprep.mubr.msk.bf16.mxu1 %vm833_vm0, %v2329_v37 }
  0x65   : > { %1011 = vmatmul.mubr.bf16.gmra.mxu0 %v2331_v38  ;;  %1139 = vmatmul.mubr.bf16.gmra.mxu1 %v2332_v39 }
  0x66   : > { %2078 = vmatprep.mubr.msk.bf16.mxu0 %vm833_vm0, %v2333_v40  ;;  %2094 = vmatprep.mubr.msk.bf16.mxu1 %vm833_vm0, %v2335_v41  ;;  %v372_v40 = vld [vmem:[#allocation2 + $0x118] sm:$0xff] }
  0x6d   : > { %1019 = vmatmul.mubr.bf16.gmra.mxu0 %v2337_v42  ;;  %1147 = vmatmul.mubr.bf16.gmra.mxu1 %v2338_v43 }
  0x6e   : > { %2079 = vmatprep.mubr.msk.bf16.mxu0 %vm833_vm0, %v2339_v44  ;;  %2095 = vmatprep.mubr.msk.bf16.mxu1 %vm833_vm0, %v2341_v45 }
  0x75   : > { %1027 = vmatmul.mubr.bf16.gmra.mxu0 %v2343_v46  ;;  %1155 = vmatmul.mubr.bf16.gmra.mxu1 %v2344_v47 }
  0x76   : > { %2080 = vmatprep.mubr.msk.bf16.mxu0 %vm833_vm0, %v2345_v48  ;;  %2096 = vmatprep.mubr.msk.bf16.mxu1 %vm833_vm0, %v2347_v49  ;;  %v341_v49 = vld [vmem:[#allocation2 + $0x20] sm:$0xff] }
  0x7d   : > { %1035 = vmatmul.mubr.bf16.gmra.mxu0 %v2349_v50  ;;  %1163 = vmatmul.mubr.bf16.gmra.mxu1 %v2350_v51 }
  0x7e   : > { %2081 = vmatprep.mubr.msk.bf16.mxu0 %vm833_vm0, %v2351_v52  ;;  %2097 = vmatprep.mubr.msk.bf16.mxu1 %vm833_vm0, %v2353_v53 }
  0x85   : > { %1043 = vmatmul.mubr.bf16.gmra.mxu0 %v2355_v54  ;;  %1171 = vmatmul.mubr.bf16.gmra.mxu1 %v2356_v55  ;;  %v373_v54 = vld [vmem:[#allocation2 + $0x120] sm:$0xff] }
  0x86   : > { %2082 = vmatprep.mubr.msk.bf16.mxu0 %vm833_vm0, %v2357_v56  ;;  %2098 = vmatprep.mubr.msk.bf16.mxu1 %vm833_vm0, %v2359_v57 }
  0x8d   : > { %1051 = vmatmul.mubr.bf16.gmra.mxu0 %v2361_v58  ;;  %1179 = vmatmul.mubr.bf16.gmra.mxu1 %v2362_v59 }
  0x8e   : > { %2083 = vmatprep.mubr.msk.bf16.mxu0 %vm833_vm0, %v2363_v60  ;;  %2099 = vmatprep.mubr.msk.bf16.mxu1 %vm833_vm0, %v2365_v61 }
  0x95   : > { %1059 = vmatmul.mubr.bf16.gmra.mxu0 %v2367_v62  ;;  %1187 = vmatmul.mubr.bf16.gmra.mxu1 %v2368_v63 }
  0x96   : > { %2084 = vmatprep.mubr.msk.bf16.mxu0 %vm833_vm0, %v2369_v0  ;;  %2100 = vmatprep.mubr.msk.bf16.mxu1 %vm833_vm0, %v2371_v1  ;;  %v342_v1 = vld [vmem:[#allocation2 + $0x28] sm:$0xff] }
  0x9d   : > { %1067 = vmatmul.mubr.bf16.gmra.mxu0 %v2373_v2  ;;  %1195 = vmatmul.mubr.bf16.gmra.mxu1 %v2374_v3 }
  0x9e   : > { %2085 = vmatprep.mubr.msk.bf16.mxu0 %vm833_vm0, %v2375_v4  ;;  %2101 = vmatprep.mubr.msk.bf16.mxu1 %vm833_vm0, %v2377_v5 }
  0xa5   : > { %1075 = vmatmul.mubr.bf16.gmra.mxu0 %v2379_v6  ;;  %1203 = vmatmul.mubr.bf16.gmra.mxu1 %v2380_v7  ;;  %v374_v6 = vld [vmem:[#allocation2 + $0x128] sm:$0xff] }
  0xa6   : > { %2086 = vmatprep.mubr.msk.bf16.mxu0 %vm833_vm0, %v2381_v8  ;;  %2102 = vmatprep.mubr.msk.bf16.mxu1 %vm833_vm0, %v2383_v9 }
  0xad   : > { %1083 = vmatmul.mubr.bf16.gmra.mxu0 %v2385_v10  ;;  %1211 = vmatmul.mubr.bf16.gmra.mxu1 %v2386_v11 }
  0xf5   : > { %v964_v14 = vpop.f32.mrf.mxu0  ;;  %v1092_v15 = vpop.f32.mrf.mxu1 }
  0xf6   : > { %v1219_v16 = vadd.f32 %v964_v14, %v337_v12  ;;  %v1251_v17 = vadd.f32 %v1092_v15, %v369_v13 }
  0xf7   : > { %v966_v18 = vpop.f32.mrf.mxu0  ;;  %v1094_v19 = vpop.f32.mrf.mxu1 }
  0xf8   : > { %1284 = vst.msk [vmem:[#allocation2] sm:$0xff] %vm272_vm1, %v1219_v16  ;;  %1316 = vst.msk [vmem:[#allocation2 + $0x100] sm:$0xff] %vm272_vm1, %v1251_v17  ;;  %v343_v17 = vld [vmem:[#allocation2 + $0x30] sm:$0xff] }
  0xf9   : > { %v967_v22 = vpop.f32.mrf.mxu0  ;;  %v1095_v23 = vpop.f32.mrf.mxu1 }
  0xfa   : > { %v1220_v24 = vadd.f32 %v967_v22, %v338_v20  ;;  %v1252_v25 = vadd.f32 %v1095_v23, %v370_v21  ;;  %v375_v22 = vld [vmem:[#allocation2 + $0x130] sm:$0xff] }
  0xfb   : > { %v969_v26 = vpop.f32.mrf.mxu0  ;;  %v1097_v27 = vpop.f32.mrf.mxu1 }
  0xfc   : > { %1285 = vst.msk [vmem:[#allocation2 + $0x8] sm:$0xff] %vm272_vm1, %v1220_v24  ;;  %1317 = vst.msk [vmem:[#allocation2 + $0x108] sm:$0xff] %vm272_vm1, %v1252_v25 }
  0xfd   : > { %v972_v31 = vpop.f32.mrf.mxu0  ;;  %v1100_v32 = vpop.f32.mrf.mxu1 }
  0xfe   : > { %v1221_v33 = vadd.f32 %v972_v31, %v339_v28  ;;  %v1253_v34 = vadd.f32 %v1100_v32, %v371_v29 }
  0xff   : > { %v1351_v36 = vld [vmem:[#allocation2] sm:$0xff]  ;;  %v974_v38 = vpop.f32.mrf.mxu0  ;;  %v1102_v39 = vpop.f32.mrf.mxu1 }
 0x100   : > { %v1383_v37 = vld [vmem:[#allocation2 + $0x100] sm:$0xff]  ;;  %v1422_v41 = vadd.f32 %v2728_v30, %v1351_v36  ;;  %1286 = vst.msk [vmem:[#allocation2 + $0x10] sm:$0xff] %vm272_vm1, %v1221_v33  ;;  %1318 = vst.msk [vmem:[#allocation2 + $0x110] sm:$0xff] %vm272_vm1, %v1253_v34  ;;  %v344_v34 = vld [vmem:[#allocation2 + $0x38] sm:$0xff] }
 0x101   : > { %v1454_v42 = vadd.f32 %v2728_v30, %v1383_v37  ;;  %v975_v43 = vpop.f32.mrf.mxu0  ;;  %v1103_v44 = vpop.f32.mrf.mxu1  ;;  %v376_v39 = vld [vmem:[#allocation2 + $0x138] sm:$0xff] }
 0x102   : > { %v1486_v45 = vmax.f32 %v1422_v41, 0.0  ;;  %v1222_v47 = vadd.f32 %v975_v43, %v340_v35  ;;  %v1254_v48 = vadd.f32 %v1103_v44, %v372_v40 }
 0x103   : > { %v1518_v46 = vmax.f32 %v1454_v42, 0.0  ;;  %v1352_v50 = vld [vmem:[#allocation2 + $0x8] sm:$0xff]  ;;  %v977_v52 = vpop.f32.mrf.mxu0  ;;  %v1105_v53 = vpop.f32.mrf.mxu1 }
 0x104   : > { %v1384_v51 = vld [vmem:[#allocation2 + $0x108] sm:$0xff]  ;;  %v2171_v55 = vpack.c.bf16 %v1486_v45, %v1486_v45  ;;  %v1423_v57 = vadd.f32 %v2728_v30, %v1352_v50  ;;  %1287 = vst.msk [vmem:[#allocation2 + $0x18] sm:$0xff] %vm272_vm1, %v1222_v47  ;;  %1319 = vst.msk [vmem:[#allocation2 + $0x118] sm:$0xff] %vm272_vm1, %v1254_v48  ;;  %v345_v50 = vld [vmem:[#allocation2 + $0x40] sm:$0xff] }
 0x105   : > { %v2203_v56 = vpack.c.bf16 %v1518_v46, %v1518_v46  ;;  %v1455_v58 = vadd.f32 %v2728_v30, %v1384_v51  ;;  %v980_v59 = vpop.f32.mrf.mxu0  ;;  %v1108_v60 = vpop.f32.mrf.mxu1 }
 0x106   : > { %1807 = vst.msk [vmem:[%s2738_s23] sm:$0xf] %vm1806_vm2, %v2171_v55  ;;  %v1487_v61 = vmax.f32 %v1423_v57, 0.0  ;;  %v1223_v63 = vadd.f32 %v980_v59, %v341_v49  ;;  %v1255_v0 = vadd.f32 %v1108_v60, %v373_v54  ;;  %v377_v55 = vld [vmem:[#allocation2 + $0x140] sm:$0xff] }
 0x107   : > { %1839 = vst.msk [vmem:[%s2738_s23 + $0x80] sm:$0xf] %vm1806_vm2, %v2203_v56  ;;  %v1519_v62 = vmax.f32 %v1455_v58, 0.0  ;;  %v1353_v2 = vld [vmem:[#allocation2 + $0x10] sm:$0xff]  ;;  %v982_v4 = vpop.f32.mrf.mxu0  ;;  %v1110_v5 = vpop.f32.mrf.mxu1 }
 0x108   : > { %v1385_v3 = vld [vmem:[#allocation2 + $0x110] sm:$0xff]  ;;  %v2172_v7 = vpack.c.bf16 %v1487_v61, %v1487_v61  ;;  %v1424_v9 = vadd.f32 %v2728_v30, %v1353_v2  ;;  %1288 = vst.msk [vmem:[#allocation2 + $0x20] sm:$0xff] %vm272_vm1, %v1223_v63  ;;  %1320 = vst.msk [vmem:[#allocation2 + $0x120] sm:$0xff] %vm272_vm1, %v1255_v0  ;;  %v346_v2 = vld [vmem:[#allocation2 + $0x48] sm:$0xff] }
 0x109   : > { %v2204_v8 = vpack.c.bf16 %v1519_v62, %v1519_v62  ;;  %v1456_v10 = vadd.f32 %v2728_v30, %v1385_v3  ;;  %v983_v11 = vpop.f32.mrf.mxu0  ;;  %v1111_v12 = vpop.f32.mrf.mxu1 }
 0x10a   : > { %1808 = vst.msk [vmem:[%s2738_s23 + $0x4] sm:$0xf] %vm1806_vm2, %v2172_v7  ;;  %v1488_v13 = vmax.f32 %v1424_v9, 0.0  ;;  %v1224_v15 = vadd.f32 %v983_v11, %v342_v1  ;;  %v1256_v16 = vadd.f32 %v1111_v12, %v374_v6  ;;  %v378_v7 = vld [vmem:[#allocation2 + $0x148] sm:$0xff] }
 0x10b   : > { %1840 = vst.msk [vmem:[%s2738_s23 + $0x84] sm:$0xf] %vm1806_vm2, %v2204_v8  ;;  %v1520_v14 = vmax.f32 %v1456_v10, 0.0  ;;  %v1354_v18 = vld [vmem:[#allocation2 + $0x18] sm:$0xff]  ;;  %v985_v20 = vpop.f32.mrf.mxu0  ;;  %v1113_v21 = vpop.f32.mrf.mxu1 }
 0x10c   : > { %v1386_v19 = vld [vmem:[#allocation2 + $0x118] sm:$0xff]  ;;  %v2173_v23 = vpack.c.bf16 %v1488_v13, %v1488_v13  ;;  %v1425_v25 = vadd.f32 %v2728_v30, %v1354_v18  ;;  %1289 = vst.msk [vmem:[#allocation2 + $0x28] sm:$0xff] %vm272_vm1, %v1224_v15  ;;  %1321 = vst.msk [vmem:[#allocation2 + $0x128] sm:$0xff] %vm272_vm1, %v1256_v16  ;;  %v347_v18 = vld [vmem:[#allocation2 + $0x50] sm:$0xff] }
 0x10d   : > { %v2205_v24 = vpack.c.bf16 %v1520_v14, %v1520_v14  ;;  %v1457_v26 = vadd.f32 %v2728_v30, %v1386_v19  ;;  %v988_v27 = vpop.f32.mrf.mxu0  ;;  %v1116_v28 = vpop.f32.mrf.mxu1 }
 0x10e   : > { %1809 = vst.msk [vmem:[%s2738_s23 + $0x8] sm:$0xf] %vm1806_vm2, %v2173_v23  ;;  %v1489_v29 = vmax.f32 %v1425_v25, 0.0  ;;  %v1225_v32 = vadd.f32 %v988_v27, %v343_v17  ;;  %v1257_v33 = vadd.f32 %v1116_v28, %v375_v22  ;;  %v379_v23 = vld [vmem:[#allocation2 + $0x150] sm:$0xff] }
 0x10f   : > { %1841 = vst.msk [vmem:[%s2738_s23 + $0x88] sm:$0xf] %vm1806_vm2, %v2205_v24  ;;  %v1521_v31 = vmax.f32 %v1457_v26, 0.0  ;;  %v1355_v35 = vld [vmem:[#allocation2 + $0x20] sm:$0xff]  ;;  %v990_v37 = vpop.f32.mrf.mxu0  ;;  %v1118_v38 = vpop.f32.mrf.mxu1 }
 0x110   : > { %v1387_v36 = vld [vmem:[#allocation2 + $0x120] sm:$0xff]  ;;  %v2174_v40 = vpack.c.bf16 %v1489_v29, %v1489_v29  ;;  %v1426_v42 = vadd.f32 %v2728_v30, %v1355_v35  ;;  %1290 = vst.msk [vmem:[#allocation2 + $0x30] sm:$0xff] %vm272_vm1, %v1225_v32  ;;  %1322 = vst.msk [vmem:[#allocation2 + $0x130] sm:$0xff] %vm272_vm1, %v1257_v33  ;;  %v348_v35 = vld [vmem:[#allocation2 + $0x58] sm:$0xff] }
 0x111   : > { %v2206_v41 = vpack.c.bf16 %v1521_v31, %v1521_v31  ;;  %v1458_v43 = vadd.f32 %v2728_v30, %v1387_v36  ;;  %v991_v44 = vpop.f32.mrf.mxu0  ;;  %v1119_v45 = vpop.f32.mrf.mxu1 }
 0x112   : > { %1810 = vst.msk [vmem:[%s2738_s23 + $0xc] sm:$0xf] %vm1806_vm2, %v2174_v40  ;;  %v1490_v46 = vmax.f32 %v1426_v42, 0.0  ;;  %v1226_v48 = vadd.f32 %v991_v44, %v344_v34  ;;  %v1258_v49 = vadd.f32 %v1119_v45, %v376_v39  ;;  %v380_v40 = vld [vmem:[#allocation2 + $0x158] sm:$0xff] }
 0x113   : > { %1842 = vst.msk [vmem:[%s2738_s23 + $0x8c] sm:$0xf] %vm1806_vm2, %v2206_v41  ;;  %v1522_v47 = vmax.f32 %v1458_v43, 0.0  ;;  %v1356_v51 = vld [vmem:[#allocation2 + $0x28] sm:$0xff]  ;;  %v993_v53 = vpop.f32.mrf.mxu0  ;;  %v1121_v54 = vpop.f32.mrf.mxu1 }
 0x114   : > { %v1388_v52 = vld [vmem:[#allocation2 + $0x128] sm:$0xff]  ;;  %v2175_v56 = vpack.c.bf16 %v1490_v46, %v1490_v46  ;;  %v1427_v58 = vadd.f32 %v2728_v30, %v1356_v51  ;;  %1291 = vst.msk [vmem:[#allocation2 + $0x38] sm:$0xff] %vm272_vm1, %v1226_v48  ;;  %1323 = vst.msk [vmem:[#allocation2 + $0x138] sm:$0xff] %vm272_vm1, %v1258_v49  ;;  %v349_v51 = vld [vmem:[#allocation2 + $0x60] sm:$0xff] }
 0x115   : > { %v2207_v57 = vpack.c.bf16 %v1522_v47, %v1522_v47  ;;  %v1459_v59 = vadd.f32 %v2728_v30, %v1388_v52  ;;  %v996_v60 = vpop.f32.mrf.mxu0  ;;  %v1124_v61 = vpop.f32.mrf.mxu1 }
 0x116   : > { %1811 = vst.msk [vmem:[%s2738_s23 + $0x10] sm:$0xf] %vm1806_vm2, %v2175_v56  ;;  %v1491_v62 = vmax.f32 %v1427_v58, 0.0  ;;  %v1227_v0 = vadd.f32 %v996_v60, %v345_v50  ;;  %v1259_v1 = vadd.f32 %v1124_v61, %v377_v55  ;;  %v381_v56 = vld [vmem:[#allocation2 + $0x160] sm:$0xff] }
 0x117   : > { %1843 = vst.msk [vmem:[%s2738_s23 + $0x90] sm:$0xf] %vm1806_vm2, %v2207_v57  ;;  %v1523_v63 = vmax.f32 %v1459_v59, 0.0  ;;  %v1357_v3 = vld [vmem:[#allocation2 + $0x30] sm:$0xff]  ;;  %v998_v5 = vpop.f32.mrf.mxu0  ;;  %v1126_v6 = vpop.f32.mrf.mxu1 }
 0x118   : > { %v1389_v4 = vld [vmem:[#allocation2 + $0x130] sm:$0xff]  ;;  %v2176_v8 = vpack.c.bf16 %v1491_v62, %v1491_v62  ;;  %v1428_v10 = vadd.f32 %v2728_v30, %v1357_v3  ;;  %1292 = vst.msk [vmem:[#allocation2 + $0x40] sm:$0xff] %vm272_vm1, %v1227_v0  ;;  %1324 = vst.msk [vmem:[#allocation2 + $0x140] sm:$0xff] %vm272_vm1, %v1259_v1  ;;  %v350_v3 = vld [vmem:[#allocation2 + $0x68] sm:$0xff] }
 0x119   : > { %v2208_v9 = vpack.c.bf16 %v1523_v63, %v1523_v63  ;;  %v1460_v11 = vadd.f32 %v2728_v30, %v1389_v4  ;;  %v999_v12 = vpop.f32.mrf.mxu0  ;;  %v1127_v13 = vpop.f32.mrf.mxu1 }
 0x11a   : > { %1812 = vst.msk [vmem:[%s2738_s23 + $0x14] sm:$0xf] %vm1806_vm2, %v2176_v8  ;;  %v1492_v14 = vmax.f32 %v1428_v10, 0.0  ;;  %v1228_v16 = vadd.f32 %v999_v12, %v346_v2  ;;  %v1260_v17 = vadd.f32 %v1127_v13, %v378_v7  ;;  %v382_v8 = vld [vmem:[#allocation2 + $0x168] sm:$0xff] }
 0x11b   : > { %1844 = vst.msk [vmem:[%s2738_s23 + $0x94] sm:$0xf] %vm1806_vm2, %v2208_v9  ;;  %v1524_v15 = vmax.f32 %v1460_v11, 0.0  ;;  %v1358_v19 = vld [vmem:[#allocation2 + $0x38] sm:$0xff]  ;;  %v1001_v21 = vpop.f32.mrf.mxu0  ;;  %v1129_v22 = vpop.f32.mrf.mxu1 }
 0x11c   : > { %v1390_v20 = vld [vmem:[#allocation2 + $0x138] sm:$0xff]  ;;  %v2177_v24 = vpack.c.bf16 %v1492_v14, %v1492_v14  ;;  %v1429_v26 = vadd.f32 %v2728_v30, %v1358_v19  ;;  %1293 = vst.msk [vmem:[#allocation2 + $0x48] sm:$0xff] %vm272_vm1, %v1228_v16  ;;  %1325 = vst.msk [vmem:[#allocation2 + $0x148] sm:$0xff] %vm272_vm1, %v1260_v17  ;;  %v351_v19 = vld [vmem:[#allocation2 + $0x70] sm:$0xff] }
 0x11d   : > { %v2209_v25 = vpack.c.bf16 %v1524_v15, %v1524_v15  ;;  %v1461_v27 = vadd.f32 %v2728_v30, %v1390_v20  ;;  %v1004_v28 = vpop.f32.mrf.mxu0  ;;  %v1132_v29 = vpop.f32.mrf.mxu1 }
 0x11e   : > { %1813 = vst.msk [vmem:[%s2738_s23 + $0x18] sm:$0xf] %vm1806_vm2, %v2177_v24  ;;  %v1493_v31 = vmax.f32 %v1429_v26, 0.0  ;;  %v1229_v33 = vadd.f32 %v1004_v28, %v347_v18  ;;  %v1261_v34 = vadd.f32 %v1132_v29, %v379_v23  ;;  %v383_v24 = vld [vmem:[#allocation2 + $0x170] sm:$0xff] }
 0x11f   : > { %1845 = vst.msk [vmem:[%s2738_s23 + $0x98] sm:$0xf] %vm1806_vm2, %v2209_v25  ;;  %v1525_v32 = vmax.f32 %v1461_v27, 0.0  ;;  %v1359_v36 = vld [vmem:[#allocation2 + $0x40] sm:$0xff]  ;;  %v1006_v38 = vpop.f32.mrf.mxu0  ;;  %v1134_v39 = vpop.f32.mrf.mxu1 }
 0x120   : > { %v1391_v37 = vld [vmem:[#allocation2 + $0x140] sm:$0xff]  ;;  %v2178_v41 = vpack.c.bf16 %v1493_v31, %v1493_v31  ;;  %v1430_v43 = vadd.f32 %v2728_v30, %v1359_v36  ;;  %1294 = vst.msk [vmem:[#allocation2 + $0x50] sm:$0xff] %vm272_vm1, %v1229_v33  ;;  %1326 = vst.msk [vmem:[#allocation2 + $0x150] sm:$0xff] %vm272_vm1, %v1261_v34  ;;  %v352_v36 = vld [vmem:[#allocation2 + $0x78] sm:$0xff] }
 0x121   : > { %v2210_v42 = vpack.c.bf16 %v1525_v32, %v1525_v32  ;;  %v1462_v44 = vadd.f32 %v2728_v30, %v1391_v37  ;;  %v1007_v45 = vpop.f32.mrf.mxu0  ;;  %v1135_v46 = vpop.f32.mrf.mxu1 }
 0x122   : > { %1814 = vst.msk [vmem:[%s2738_s23 + $0x1c] sm:$0xf] %vm1806_vm2, %v2178_v41  ;;  %v1494_v47 = vmax.f32 %v1430_v43, 0.0  ;;  %v1230_v49 = vadd.f32 %v1007_v45, %v348_v35  ;;  %v1262_v50 = vadd.f32 %v1135_v46, %v380_v40  ;;  %v384_v41 = vld [vmem:[#allocation2 + $0x178] sm:$0xff] }
 0x123   : > { %1846 = vst.msk [vmem:[%s2738_s23 + $0x9c] sm:$0xf] %vm1806_vm2, %v2210_v42  ;;  %v1526_v48 = vmax.f32 %v1462_v44, 0.0  ;;  %v1360_v52 = vld [vmem:[#allocation2 + $0x48] sm:$0xff]  ;;  %v1009_v54 = vpop.f32.mrf.mxu0  ;;  %v1137_v55 = vpop.f32.mrf.mxu1 }
 0x124   : > { %v1392_v53 = vld [vmem:[#allocation2 + $0x148] sm:$0xff]  ;;  %v2179_v57 = vpack.c.bf16 %v1494_v47, %v1494_v47  ;;  %v1431_v59 = vadd.f32 %v2728_v30, %v1360_v52  ;;  %1295 = vst.msk [vmem:[#allocation2 + $0x58] sm:$0xff] %vm272_vm1, %v1230_v49  ;;  %1327 = vst.msk [vmem:[#allocation2 + $0x158] sm:$0xff] %vm272_vm1, %v1262_v50  ;;  %v353_v52 = vld [vmem:[#allocation2 + $0x80] sm:$0xff] }
 0x125   : > { %v2211_v58 = vpack.c.bf16 %v1526_v48, %v1526_v48  ;;  %v1463_v60 = vadd.f32 %v2728_v30, %v1392_v53  ;;  %v1012_v61 = vpop.f32.mrf.mxu0  ;;  %v1140_v62 = vpop.f32.mrf.mxu1 }
 0x126   : > { %1815 = vst.msk [vmem:[%s2738_s23 + $0x20] sm:$0xf] %vm1806_vm2, %v2179_v57  ;;  %v1495_v63 = vmax.f32 %v1431_v59, 0.0  ;;  %v1231_v1 = vadd.f32 %v1012_v61, %v349_v51  ;;  %v1263_v2 = vadd.f32 %v1140_v62, %v381_v56  ;;  %v385_v57 = vld [vmem:[#allocation2 + $0x180] sm:$0xff] }
 0x127   : > { %1847 = vst.msk [vmem:[%s2738_s23 + $0xa0] sm:$0xf] %vm1806_vm2, %v2211_v58  ;;  %v1527_v0 = vmax.f32 %v1463_v60, 0.0  ;;  %v1361_v4 = vld [vmem:[#allocation2 + $0x50] sm:$0xff]  ;;  %v1014_v6 = vpop.f32.mrf.mxu0  ;;  %v1142_v7 = vpop.f32.mrf.mxu1 }
 0x128   : > { %v1393_v5 = vld [vmem:[#allocation2 + $0x150] sm:$0xff]  ;;  %v2180_v9 = vpack.c.bf16 %v1495_v63, %v1495_v63  ;;  %v1432_v11 = vadd.f32 %v2728_v30, %v1361_v4  ;;  %1296 = vst.msk [vmem:[#allocation2 + $0x60] sm:$0xff] %vm272_vm1, %v1231_v1  ;;  %1328 = vst.msk [vmem:[#allocation2 + $0x160] sm:$0xff] %vm272_vm1, %v1263_v2  ;;  %v354_v4 = vld [vmem:[#allocation2 + $0x88] sm:$0xff] }
 0x129   : > { %v2212_v10 = vpack.c.bf16 %v1527_v0, %v1527_v0  ;;  %v1464_v12 = vadd.f32 %v2728_v30, %v1393_v5  ;;  %v1015_v13 = vpop.f32.mrf.mxu0  ;;  %v1143_v14 = vpop.f32.mrf.mxu1 }
 0x12a   : > { %1816 = vst.msk [vmem:[%s2738_s23 + $0x24] sm:$0xf] %vm1806_vm2, %v2180_v9  ;;  %v1496_v15 = vmax.f32 %v1432_v11, 0.0  ;;  %v1232_v17 = vadd.f32 %v1015_v13, %v350_v3  ;;  %v1264_v18 = vadd.f32 %v1143_v14, %v382_v8  ;;  %v386_v9 = vld [vmem:[#allocation2 + $0x188] sm:$0xff] }
 0x12b   : > { %1848 = vst.msk [vmem:[%s2738_s23 + $0xa4] sm:$0xf] %vm1806_vm2, %v2212_v10  ;;  %v1528_v16 = vmax.f32 %v1464_v12, 0.0  ;;  %v1362_v20 = vld [vmem:[#allocation2 + $0x58] sm:$0xff]  ;;  %v1017_v22 = vpop.f32.mrf.mxu0  ;;  %v1145_v23 = vpop.f32.mrf.mxu1 }
 0x12c   : > { %v1394_v21 = vld [vmem:[#allocation2 + $0x158] sm:$0xff]  ;;  %v2181_v25 = vpack.c.bf16 %v1496_v15, %v1496_v15  ;;  %v1433_v27 = vadd.f32 %v2728_v30, %v1362_v20  ;;  %1297 = vst.msk [vmem:[#allocation2 + $0x68] sm:$0xff] %vm272_vm1, %v1232_v17  ;;  %1329 = vst.msk [vmem:[#allocation2 + $0x168] sm:$0xff] %vm272_vm1, %v1264_v18  ;;  %v355_v20 = vld [vmem:[#allocation2 + $0x90] sm:$0xff] }
 0x12d   : > { %v2213_v26 = vpack.c.bf16 %v1528_v16, %v1528_v16  ;;  %v1465_v28 = vadd.f32 %v2728_v30, %v1394_v21  ;;  %v1020_v29 = vpop.f32.mrf.mxu0  ;;  %v1148_v31 = vpop.f32.mrf.mxu1 }
 0x12e   : > { %1817 = vst.msk [vmem:[%s2738_s23 + $0x28] sm:$0xf] %vm1806_vm2, %v2181_v25  ;;  %v1497_v32 = vmax.f32 %v1433_v27, 0.0  ;;  %v1233_v34 = vadd.f32 %v1020_v29, %v351_v19  ;;  %v1265_v35 = vadd.f32 %v1148_v31, %v383_v24  ;;  %v387_v25 = vld [vmem:[#allocation2 + $0x190] sm:$0xff] }
 0x12f   : > { %1849 = vst.msk [vmem:[%s2738_s23 + $0xa8] sm:$0xf] %vm1806_vm2, %v2213_v26  ;;  %v1529_v33 = vmax.f32 %v1465_v28, 0.0  ;;  %v1363_v37 = vld [vmem:[#allocation2 + $0x60] sm:$0xff]  ;;  %v1022_v39 = vpop.f32.mrf.mxu0  ;;  %v1150_v40 = vpop.f32.mrf.mxu1 }
 0x130   : > { %v1395_v38 = vld [vmem:[#allocation2 + $0x160] sm:$0xff]  ;;  %v2182_v42 = vpack.c.bf16 %v1497_v32, %v1497_v32  ;;  %v1434_v44 = vadd.f32 %v2728_v30, %v1363_v37  ;;  %1298 = vst.msk [vmem:[#allocation2 + $0x70] sm:$0xff] %vm272_vm1, %v1233_v34  ;;  %1330 = vst.msk [vmem:[#allocation2 + $0x170] sm:$0xff] %vm272_vm1, %v1265_v35  ;;  %v356_v37 = vld [vmem:[#allocation2 + $0x98] sm:$0xff] }
 0x131   : > { %v2214_v43 = vpack.c.bf16 %v1529_v33, %v1529_v33  ;;  %v1466_v45 = vadd.f32 %v2728_v30, %v1395_v38  ;;  %v1023_v46 = vpop.f32.mrf.mxu0  ;;  %v1151_v47 = vpop.f32.mrf.mxu1 }
 0x132   : > { %1818 = vst.msk [vmem:[%s2738_s23 + $0x2c] sm:$0xf] %vm1806_vm2, %v2182_v42  ;;  %v1498_v48 = vmax.f32 %v1434_v44, 0.0  ;;  %v1234_v50 = vadd.f32 %v1023_v46, %v352_v36  ;;  %v1266_v51 = vadd.f32 %v1151_v47, %v384_v41  ;;  %v388_v42 = vld [vmem:[#allocation2 + $0x198] sm:$0xff] }
 0x133   : > { %1850 = vst.msk [vmem:[%s2738_s23 + $0xac] sm:$0xf] %vm1806_vm2, %v2214_v43  ;;  %v1530_v49 = vmax.f32 %v1466_v45, 0.0  ;;  %v1364_v53 = vld [vmem:[#allocation2 + $0x68] sm:$0xff]  ;;  %v1025_v55 = vpop.f32.mrf.mxu0  ;;  %v1153_v56 = vpop.f32.mrf.mxu1 }
 0x134   : > { %v1396_v54 = vld [vmem:[#allocation2 + $0x168] sm:$0xff]  ;;  %v2183_v58 = vpack.c.bf16 %v1498_v48, %v1498_v48  ;;  %v1435_v60 = vadd.f32 %v2728_v30, %v1364_v53  ;;  %1299 = vst.msk [vmem:[#allocation2 + $0x78] sm:$0xff] %vm272_vm1, %v1234_v50  ;;  %1331 = vst.msk [vmem:[#allocation2 + $0x178] sm:$0xff] %vm272_vm1, %v1266_v51  ;;  %v357_v53 = vld [vmem:[#allocation2 + $0xa0] sm:$0xff] }
 0x135   : > { %v2215_v59 = vpack.c.bf16 %v1530_v49, %v1530_v49  ;;  %v1467_v61 = vadd.f32 %v2728_v30, %v1396_v54  ;;  %v1028_v62 = vpop.f32.mrf.mxu0  ;;  %v1156_v63 = vpop.f32.mrf.mxu1 }
 0x136   : > { %1819 = vst.msk [vmem:[%s2738_s23 + $0x30] sm:$0xf] %vm1806_vm2, %v2183_v58  ;;  %v1499_v0 = vmax.f32 %v1435_v60, 0.0  ;;  %v1235_v2 = vadd.f32 %v1028_v62, %v353_v52  ;;  %v1267_v3 = vadd.f32 %v1156_v63, %v385_v57  ;;  %v389_v58 = vld [vmem:[#allocation2 + $0x1a0] sm:$0xff] }
 0x137   : > { %1851 = vst.msk [vmem:[%s2738_s23 + $0xb0] sm:$0xf] %vm1806_vm2, %v2215_v59  ;;  %v1531_v1 = vmax.f32 %v1467_v61, 0.0  ;;  %v1365_v5 = vld [vmem:[#allocation2 + $0x70] sm:$0xff]  ;;  %v1030_v7 = vpop.f32.mrf.mxu0  ;;  %v1158_v8 = vpop.f32.mrf.mxu1 }
 0x138   : > { %v1397_v6 = vld [vmem:[#allocation2 + $0x170] sm:$0xff]  ;;  %v2184_v10 = vpack.c.bf16 %v1499_v0, %v1499_v0  ;;  %v1436_v12 = vadd.f32 %v2728_v30, %v1365_v5  ;;  %1300 = vst.msk [vmem:[#allocation2 + $0x80] sm:$0xff] %vm272_vm1, %v1235_v2  ;;  %1332 = vst.msk [vmem:[#allocation2 + $0x180] sm:$0xff] %vm272_vm1, %v1267_v3  ;;  %v358_v5 = vld [vmem:[#allocation2 + $0xa8] sm:$0xff] }
 0x139   : > { %v2216_v11 = vpack.c.bf16 %v1531_v1, %v1531_v1  ;;  %v1468_v13 = vadd.f32 %v2728_v30, %v1397_v6  ;;  %v1031_v14 = vpop.f32.mrf.mxu0  ;;  %v1159_v15 = vpop.f32.mrf.mxu1 }
 0x13a   : > { %1820 = vst.msk [vmem:[%s2738_s23 + $0x34] sm:$0xf] %vm1806_vm2, %v2184_v10  ;;  %v1500_v16 = vmax.f32 %v1436_v12, 0.0  ;;  %v1236_v18 = vadd.f32 %v1031_v14, %v354_v4  ;;  %v1268_v19 = vadd.f32 %v1159_v15, %v386_v9  ;;  %v390_v10 = vld [vmem:[#allocation2 + $0x1a8] sm:$0xff] }
 0x13b   : > { %1852 = vst.msk [vmem:[%s2738_s23 + $0xb4] sm:$0xf] %vm1806_vm2, %v2216_v11  ;;  %v1532_v17 = vmax.f32 %v1468_v13, 0.0  ;;  %v1366_v21 = vld [vmem:[#allocation2 + $0x78] sm:$0xff]  ;;  %v1033_v23 = vpop.f32.mrf.mxu0  ;;  %v1161_v24 = vpop.f32.mrf.mxu1 }
 0x13c   : > { %v1398_v22 = vld [vmem:[#allocation2 + $0x178] sm:$0xff]  ;;  %v2185_v26 = vpack.c.bf16 %v1500_v16, %v1500_v16  ;;  %v1437_v28 = vadd.f32 %v2728_v30, %v1366_v21  ;;  %1301 = vst.msk [vmem:[#allocation2 + $0x88] sm:$0xff] %vm272_vm1, %v1236_v18  ;;  %1333 = vst.msk [vmem:[#allocation2 + $0x188] sm:$0xff] %vm272_vm1, %v1268_v19  ;;  %v359_v21 = vld [vmem:[#allocation2 + $0xb0] sm:$0xff] }
 0x13d   : > { %v2217_v27 = vpack.c.bf16 %v1532_v17, %v1532_v17  ;;  %v1469_v29 = vadd.f32 %v2728_v30, %v1398_v22  ;;  %v1036_v31 = vpop.f32.mrf.mxu0  ;;  %v1164_v32 = vpop.f32.mrf.mxu1 }
 0x13e   : > { %1821 = vst.msk [vmem:[%s2738_s23 + $0x38] sm:$0xf] %vm1806_vm2, %v2185_v26  ;;  %v1501_v33 = vmax.f32 %v1437_v28, 0.0  ;;  %v1237_v35 = vadd.f32 %v1036_v31, %v355_v20  ;;  %v1269_v36 = vadd.f32 %v1164_v32, %v387_v25  ;;  %v391_v26 = vld [vmem:[#allocation2 + $0x1b0] sm:$0xff] }
 0x13f   : > { %1853 = vst.msk [vmem:[%s2738_s23 + $0xb8] sm:$0xf] %vm1806_vm2, %v2217_v27  ;;  %v1533_v34 = vmax.f32 %v1469_v29, 0.0  ;;  %v1367_v38 = vld [vmem:[#allocation2 + $0x80] sm:$0xff]  ;;  %v1038_v40 = vpop.f32.mrf.mxu0  ;;  %v1166_v41 = vpop.f32.mrf.mxu1 }
 0x140   : > { %v1399_v39 = vld [vmem:[#allocation2 + $0x180] sm:$0xff]  ;;  %v2186_v43 = vpack.c.bf16 %v1501_v33, %v1501_v33  ;;  %v1438_v45 = vadd.f32 %v2728_v30, %v1367_v38  ;;  %1302 = vst.msk [vmem:[#allocation2 + $0x90] sm:$0xff] %vm272_vm1, %v1237_v35  ;;  %1334 = vst.msk [vmem:[#allocation2 + $0x190] sm:$0xff] %vm272_vm1, %v1269_v36  ;;  %v360_v38 = vld [vmem:[#allocation2 + $0xb8] sm:$0xff] }
 0x141   : > { %v2218_v44 = vpack.c.bf16 %v1533_v34, %v1533_v34  ;;  %v1470_v46 = vadd.f32 %v2728_v30, %v1399_v39  ;;  %v1039_v47 = vpop.f32.mrf.mxu0  ;;  %v1167_v48 = vpop.f32.mrf.mxu1 }
 0x142   : > { %1822 = vst.msk [vmem:[%s2738_s23 + $0x3c] sm:$0xf] %vm1806_vm2, %v2186_v43  ;;  %v1502_v49 = vmax.f32 %v1438_v45, 0.0  ;;  %v1238_v51 = vadd.f32 %v1039_v47, %v356_v37  ;;  %v1270_v52 = vadd.f32 %v1167_v48, %v388_v42  ;;  %v392_v43 = vld [vmem:[#allocation2 + $0x1b8] sm:$0xff] }
 0x143   : > { %1854 = vst.msk [vmem:[%s2738_s23 + $0xbc] sm:$0xf] %vm1806_vm2, %v2218_v44  ;;  %v1534_v50 = vmax.f32 %v1470_v46, 0.0  ;;  %v1368_v54 = vld [vmem:[#allocation2 + $0x88] sm:$0xff]  ;;  %v1041_v56 = vpop.f32.mrf.mxu0  ;;  %v1169_v57 = vpop.f32.mrf.mxu1 }
 0x144   : > { %v1400_v55 = vld [vmem:[#allocation2 + $0x188] sm:$0xff]  ;;  %v2187_v59 = vpack.c.bf16 %v1502_v49, %v1502_v49  ;;  %v1439_v61 = vadd.f32 %v2728_v30, %v1368_v54  ;;  %1303 = vst.msk [vmem:[#allocation2 + $0x98] sm:$0xff] %vm272_vm1, %v1238_v51  ;;  %1335 = vst.msk [vmem:[#allocation2 + $0x198] sm:$0xff] %vm272_vm1, %v1270_v52  ;;  %v361_v54 = vld [vmem:[#allocation2 + $0xc0] sm:$0xff] }
 0x145   : > { %v2219_v60 = vpack.c.bf16 %v1534_v50, %v1534_v50  ;;  %v1471_v62 = vadd.f32 %v2728_v30, %v1400_v55  ;;  %v1044_v63 = vpop.f32.mrf.mxu0  ;;  %v1172_v0 = vpop.f32.mrf.mxu1 }
 0x146   : > { %1823 = vst.msk [vmem:[%s2738_s23 + $0x40] sm:$0xf] %vm1806_vm2, %v2187_v59  ;;  %v1503_v1 = vmax.f32 %v1439_v61, 0.0  ;;  %v1239_v3 = vadd.f32 %v1044_v63, %v357_v53  ;;  %v1271_v4 = vadd.f32 %v1172_v0, %v389_v58  ;;  %v393_v59 = vld [vmem:[#allocation2 + $0x1c0] sm:$0xff] }
 0x147   : > { %1855 = vst.msk [vmem:[%s2738_s23 + $0xc0] sm:$0xf] %vm1806_vm2, %v2219_v60  ;;  %v1535_v2 = vmax.f32 %v1471_v62, 0.0  ;;  %v1369_v6 = vld [vmem:[#allocation2 + $0x90] sm:$0xff]  ;;  %v1046_v8 = vpop.f32.mrf.mxu0  ;;  %v1174_v9 = vpop.f32.mrf.mxu1 }
 0x148   : > { %v1401_v7 = vld [vmem:[#allocation2 + $0x190] sm:$0xff]  ;;  %v2188_v11 = vpack.c.bf16 %v1503_v1, %v1503_v1  ;;  %v1440_v13 = vadd.f32 %v2728_v30, %v1369_v6  ;;  %1304 = vst.msk [vmem:[#allocation2 + $0xa0] sm:$0xff] %vm272_vm1, %v1239_v3  ;;  %1336 = vst.msk [vmem:[#allocation2 + $0x1a0] sm:$0xff] %vm272_vm1, %v1271_v4  ;;  %v362_v6 = vld [vmem:[#allocation2 + $0xc8] sm:$0xff] }
 0x149   : > { %v2220_v12 = vpack.c.bf16 %v1535_v2, %v1535_v2  ;;  %v1472_v14 = vadd.f32 %v2728_v30, %v1401_v7  ;;  %v1047_v15 = vpop.f32.mrf.mxu0  ;;  %v1175_v16 = vpop.f32.mrf.mxu1 }
 0x14a   : > { %1824 = vst.msk [vmem:[%s2738_s23 + $0x44] sm:$0xf] %vm1806_vm2, %v2188_v11  ;;  %v1504_v17 = vmax.f32 %v1440_v13, 0.0  ;;  %v1240_v19 = vadd.f32 %v1047_v15, %v358_v5  ;;  %v1272_v20 = vadd.f32 %v1175_v16, %v390_v10  ;;  %v394_v11 = vld [vmem:[#allocation2 + $0x1c8] sm:$0xff] }
 0x14b   : > { %1856 = vst.msk [vmem:[%s2738_s23 + $0xc4] sm:$0xf] %vm1806_vm2, %v2220_v12  ;;  %v1536_v18 = vmax.f32 %v1472_v14, 0.0  ;;  %v1370_v22 = vld [vmem:[#allocation2 + $0x98] sm:$0xff]  ;;  %v1049_v24 = vpop.f32.mrf.mxu0  ;;  %v1177_v25 = vpop.f32.mrf.mxu1 }
 0x14c   : > { %v1402_v23 = vld [vmem:[#allocation2 + $0x198] sm:$0xff]  ;;  %v2189_v27 = vpack.c.bf16 %v1504_v17, %v1504_v17  ;;  %v1441_v29 = vadd.f32 %v2728_v30, %v1370_v22  ;;  %1305 = vst.msk [vmem:[#allocation2 + $0xa8] sm:$0xff] %vm272_vm1, %v1240_v19  ;;  %1337 = vst.msk [vmem:[#allocation2 + $0x1a8] sm:$0xff] %vm272_vm1, %v1272_v20  ;;  %v363_v22 = vld [vmem:[#allocation2 + $0xd0] sm:$0xff] }
 0x14d   : > { %v2221_v28 = vpack.c.bf16 %v1536_v18, %v1536_v18  ;;  %v1473_v31 = vadd.f32 %v2728_v30, %v1402_v23  ;;  %v1052_v32 = vpop.f32.mrf.mxu0  ;;  %v1180_v33 = vpop.f32.mrf.mxu1 }
 0x14e   : > { %1825 = vst.msk [vmem:[%s2738_s23 + $0x48] sm:$0xf] %vm1806_vm2, %v2189_v27  ;;  %v1505_v34 = vmax.f32 %v1441_v29, 0.0  ;;  %v1241_v36 = vadd.f32 %v1052_v32, %v359_v21  ;;  %v1273_v37 = vadd.f32 %v1180_v33, %v391_v26  ;;  %v395_v27 = vld [vmem:[#allocation2 + $0x1d0] sm:$0xff] }
 0x14f   : > { %1857 = vst.msk [vmem:[%s2738_s23 + $0xc8] sm:$0xf] %vm1806_vm2, %v2221_v28  ;;  %v1537_v35 = vmax.f32 %v1473_v31, 0.0  ;;  %v1371_v39 = vld [vmem:[#allocation2 + $0xa0] sm:$0xff]  ;;  %v1054_v41 = vpop.f32.mrf.mxu0  ;;  %v1182_v42 = vpop.f32.mrf.mxu1 }
 0x150   : > { %v1403_v40 = vld [vmem:[#allocation2 + $0x1a0] sm:$0xff]  ;;  %v2190_v44 = vpack.c.bf16 %v1505_v34, %v1505_v34  ;;  %v1442_v46 = vadd.f32 %v2728_v30, %v1371_v39  ;;  %1306 = vst.msk [vmem:[#allocation2 + $0xb0] sm:$0xff] %vm272_vm1, %v1241_v36  ;;  %1338 = vst.msk [vmem:[#allocation2 + $0x1b0] sm:$0xff] %vm272_vm1, %v1273_v37  ;;  %v364_v39 = vld [vmem:[#allocation2 + $0xd8] sm:$0xff] }
 0x151   : > { %v2222_v45 = vpack.c.bf16 %v1537_v35, %v1537_v35  ;;  %v1474_v47 = vadd.f32 %v2728_v30, %v1403_v40  ;;  %v1055_v48 = vpop.f32.mrf.mxu0  ;;  %v1183_v49 = vpop.f32.mrf.mxu1 }
 0x152   : > { %1826 = vst.msk [vmem:[%s2738_s23 + $0x4c] sm:$0xf] %vm1806_vm2, %v2190_v44  ;;  %v1506_v50 = vmax.f32 %v1442_v46, 0.0  ;;  %v1242_v52 = vadd.f32 %v1055_v48, %v360_v38  ;;  %v1274_v53 = vadd.f32 %v1183_v49, %v392_v43  ;;  %v396_v44 = vld [vmem:[#allocation2 + $0x1d8] sm:$0xff] }
 0x153   : > { %1858 = vst.msk [vmem:[%s2738_s23 + $0xcc] sm:$0xf] %vm1806_vm2, %v2222_v45  ;;  %v1538_v51 = vmax.f32 %v1474_v47, 0.0  ;;  %v1372_v55 = vld [vmem:[#allocation2 + $0xa8] sm:$0xff]  ;;  %v1057_v57 = vpop.f32.mrf.mxu0  ;;  %v1185_v58 = vpop.f32.mrf.mxu1 }
 0x154   : > { %v1404_v56 = vld [vmem:[#allocation2 + $0x1a8] sm:$0xff]  ;;  %v2191_v60 = vpack.c.bf16 %v1506_v50, %v1506_v50  ;;  %v1443_v62 = vadd.f32 %v2728_v30, %v1372_v55  ;;  %1307 = vst.msk [vmem:[#allocation2 + $0xb8] sm:$0xff] %vm272_vm1, %v1242_v52  ;;  %1339 = vst.msk [vmem:[#allocation2 + $0x1b8] sm:$0xff] %vm272_vm1, %v1274_v53  ;;  %v365_v55 = vld [vmem:[#allocation2 + $0xe0] sm:$0xff] }
 0x155   : > { %v2223_v61 = vpack.c.bf16 %v1538_v51, %v1538_v51  ;;  %v1475_v63 = vadd.f32 %v2728_v30, %v1404_v56  ;;  %v1060_v0 = vpop.f32.mrf.mxu0  ;;  %v1188_v1 = vpop.f32.mrf.mxu1 }
 0x156   : > { %1827 = vst.msk [vmem:[%s2738_s23 + $0x50] sm:$0xf] %vm1806_vm2, %v2191_v60  ;;  %v1507_v2 = vmax.f32 %v1443_v62, 0.0  ;;  %v1243_v4 = vadd.f32 %v1060_v0, %v361_v54  ;;  %v1275_v5 = vadd.f32 %v1188_v1, %v393_v59  ;;  %v397_v59 = vld [vmem:[#allocation2 + $0x1e0] sm:$0xff] }
 0x157   : > { %1859 = vst.msk [vmem:[%s2738_s23 + $0xd0] sm:$0xf] %vm1806_vm2, %v2223_v61  ;;  %v1539_v3 = vmax.f32 %v1475_v63, 0.0  ;;  %v1373_v7 = vld [vmem:[#allocation2 + $0xb0] sm:$0xff]  ;;  %v1062_v9 = vpop.f32.mrf.mxu0  ;;  %v1190_v10 = vpop.f32.mrf.mxu1  ;;  %v2935_v62 = vld [vmem:[%s3004_s2] ss:$0 sm:$0xff] }
 0x158   : > { %v1405_v8 = vld [vmem:[#allocation2 + $0x1b0] sm:$0xff]  ;;  %v2192_v12 = vpack.c.bf16 %v1507_v2, %v1507_v2  ;;  %v1444_v14 = vadd.f32 %v2728_v30, %v1373_v7  ;;  %1308 = vst.msk [vmem:[#allocation2 + $0xc0] sm:$0xff] %vm272_vm1, %v1243_v4  ;;  %1340 = vst.msk [vmem:[#allocation2 + $0x1c0] sm:$0xff] %vm272_vm1, %v1275_v5  ;;  %v366_v7 = vld [vmem:[#allocation2 + $0xe8] sm:$0xff] }
 0x159   : > { %v2224_v13 = vpack.c.bf16 %v1539_v3, %v1539_v3  ;;  %v1476_v15 = vadd.f32 %v2728_v30, %v1405_v8  ;;  %v1063_v16 = vpop.f32.mrf.mxu0  ;;  %v1191_v17 = vpop.f32.mrf.mxu1 }
 0x15a   : > { %1828 = vst.msk [vmem:[%s2738_s23 + $0x54] sm:$0xf] %vm1806_vm2, %v2192_v12  ;;  %v1508_v18 = vmax.f32 %v1444_v14, 0.0  ;;  %v1244_v20 = vadd.f32 %v1063_v16, %v362_v6  ;;  %v1276_v21 = vadd.f32 %v1191_v17, %v394_v11  ;;  %v398_v12 = vld [vmem:[#allocation2 + $0x1e8] sm:$0xff] }
 0x15b   : > { %1860 = vst.msk [vmem:[%s2738_s23 + $0xd4] sm:$0xf] %vm1806_vm2, %v2224_v13  ;;  %v1540_v19 = vmax.f32 %v1476_v15, 0.0  ;;  %v1374_v23 = vld [vmem:[#allocation2 + $0xb8] sm:$0xff]  ;;  %v1065_v25 = vpop.f32.mrf.mxu0  ;;  %v1193_v26 = vpop.f32.mrf.mxu1 }
 0x15c   : > { %v1406_v24 = vld [vmem:[#allocation2 + $0x1b8] sm:$0xff]  ;;  %v2193_v28 = vpack.c.bf16 %v1508_v18, %v1508_v18  ;;  %v1445_v31 = vadd.f32 %v2728_v30, %v1374_v23  ;;  %1309 = vst.msk [vmem:[#allocation2 + $0xc8] sm:$0xff] %vm272_vm1, %v1244_v20  ;;  %1341 = vst.msk [vmem:[#allocation2 + $0x1c8] sm:$0xff] %vm272_vm1, %v1276_v21  ;;  %v367_v23 = vld [vmem:[#allocation2 + $0xf0] sm:$0xff] }
 0x15d   : > { %v2225_v29 = vpack.c.bf16 %v1540_v19, %v1540_v19  ;;  %v1477_v32 = vadd.f32 %v2728_v30, %v1406_v24  ;;  %v1068_v33 = vpop.f32.mrf.mxu0  ;;  %v1196_v34 = vpop.f32.mrf.mxu1 }
 0x15e   : > { %1829 = vst.msk [vmem:[%s2738_s23 + $0x58] sm:$0xf] %vm1806_vm2, %v2193_v28  ;;  %v1509_v35 = vmax.f32 %v1445_v31, 0.0  ;;  %v1245_v37 = vadd.f32 %v1068_v33, %v363_v22  ;;  %v1277_v38 = vadd.f32 %v1196_v34, %v395_v27  ;;  %v399_v28 = vld [vmem:[#allocation2 + $0x1f0] sm:$0xff] }
 0x15f   : > { %1861 = vst.msk [vmem:[%s2738_s23 + $0xd8] sm:$0xf] %vm1806_vm2, %v2225_v29  ;;  %v1541_v36 = vmax.f32 %v1477_v32, 0.0  ;;  %v1375_v40 = vld [vmem:[#allocation2 + $0xc0] sm:$0xff]  ;;  %v1070_v42 = vpop.f32.mrf.mxu0  ;;  %v1198_v43 = vpop.f32.mrf.mxu1 }
 0x160   : > { %v1407_v41 = vld [vmem:[#allocation2 + $0x1c0] sm:$0xff]  ;;  %v2194_v45 = vpack.c.bf16 %v1509_v35, %v1509_v35  ;;  %v1446_v47 = vadd.f32 %v2728_v30, %v1375_v40  ;;  %1310 = vst.msk [vmem:[#allocation2 + $0xd0] sm:$0xff] %vm272_vm1, %v1245_v37  ;;  %1342 = vst.msk [vmem:[#allocation2 + $0x1d0] sm:$0xff] %vm272_vm1, %v1277_v38  ;;  %v368_v40 = vld [vmem:[#allocation2 + $0xf8] sm:$0xff] }
 0x161   : > { %v2226_v46 = vpack.c.bf16 %v1541_v36, %v1541_v36  ;;  %v1478_v48 = vadd.f32 %v2728_v30, %v1407_v41  ;;  %v1071_v49 = vpop.f32.mrf.mxu0  ;;  %v1199_v50 = vpop.f32.mrf.mxu1 }
 0x162   : > { %1830 = vst.msk [vmem:[%s2738_s23 + $0x5c] sm:$0xf] %vm1806_vm2, %v2194_v45  ;;  %v1510_v51 = vmax.f32 %v1446_v47, 0.0  ;;  %v1246_v53 = vadd.f32 %v1071_v49, %v364_v39  ;;  %v1278_v54 = vadd.f32 %v1199_v50, %v396_v44  ;;  %v400_v45 = vld [vmem:[#allocation2 + $0x1f8] sm:$0xff] }
 0x163   : > { %1862 = vst.msk [vmem:[%s2738_s23 + $0xdc] sm:$0xf] %vm1806_vm2, %v2226_v46  ;;  %v1542_v52 = vmax.f32 %v1478_v48, 0.0  ;;  %v1376_v56 = vld [vmem:[#allocation2 + $0xc8] sm:$0xff]  ;;  %v1073_v30 = vpop.f32.mrf.mxu0  ;;  %v1201_v58 = vpop.f32.mrf.mxu1 }
 0x164   : > { %v1408_v57 = vld [vmem:[#allocation2 + $0x1c8] sm:$0xff]  ;;  %v2195_v60 = vpack.c.bf16 %v1510_v51, %v1510_v51  ;;  %v1447_v63 = vadd.f32 %v2935_v62, %v1376_v56  ;;  %1311 = vst.msk [vmem:[#allocation2 + $0xd8] sm:$0xff] %vm272_vm1, %v1246_v53  ;;  %1343 = vst.msk [vmem:[#allocation2 + $0x1d8] sm:$0xff] %vm272_vm1, %v1278_v54 }
 0x165   : > { %v2227_v61 = vpack.c.bf16 %v1542_v52, %v1542_v52  ;;  %v1479_v0 = vadd.f32 %v2935_v62, %v1408_v57  ;;  %v1076_v1 = vpop.f32.mrf.mxu0  ;;  %v1204_v2 = vpop.f32.mrf.mxu1 }
 0x166   : > { %1831 = vst.msk [vmem:[%s2738_s23 + $0x60] sm:$0xf] %vm1806_vm2, %v2195_v60  ;;  %v1511_v3 = vmax.f32 %v1447_v63, 0.0  ;;  %v1247_v5 = vadd.f32 %v1076_v1, %v365_v55  ;;  %v1279_v6 = vadd.f32 %v1204_v2, %v397_v59 }
 0x167   : > { %1863 = vst.msk [vmem:[%s2738_s23 + $0xe0] sm:$0xf] %vm1806_vm2, %v2227_v61  ;;  %v1543_v4 = vmax.f32 %v1479_v0, 0.0  ;;  %v1377_v8 = vld [vmem:[#allocation2 + $0xd0] sm:$0xff]  ;;  %v1078_v10 = vpop.f32.mrf.mxu0  ;;  %v1206_v11 = vpop.f32.mrf.mxu1 }
 0x168   : > { %v1409_v9 = vld [vmem:[#allocation2 + $0x1d0] sm:$0xff]  ;;  %v2196_v13 = vpack.c.bf16 %v1511_v3, %v1511_v3  ;;  %v1448_v15 = vadd.f32 %v2935_v62, %v1377_v8  ;;  %1312 = vst.msk [vmem:[#allocation2 + $0xe0] sm:$0xff] %vm272_vm1, %v1247_v5  ;;  %1344 = vst.msk [vmem:[#allocation2 + $0x1e0] sm:$0xff] %vm272_vm1, %v1279_v6 }
 0x169   : > { %v2228_v14 = vpack.c.bf16 %v1543_v4, %v1543_v4  ;;  %v1480_v16 = vadd.f32 %v2935_v62, %v1409_v9  ;;  %v1079_v17 = vpop.f32.mrf.mxu0  ;;  %v1207_v18 = vpop.f32.mrf.mxu1 }
 0x16a   : > { %1832 = vst.msk [vmem:[%s2738_s23 + $0x64] sm:$0xf] %vm1806_vm2, %v2196_v13  ;;  %v1512_v19 = vmax.f32 %v1448_v15, 0.0  ;;  %v1248_v21 = vadd.f32 %v1079_v17, %v366_v7  ;;  %v1280_v22 = vadd.f32 %v1207_v18, %v398_v12 }
 0x16b   : > { %1864 = vst.msk [vmem:[%s2738_s23 + $0xe4] sm:$0xf] %vm1806_vm2, %v2228_v14  ;;  %v1544_v20 = vmax.f32 %v1480_v16, 0.0  ;;  %v1378_v24 = vld [vmem:[#allocation2 + $0xd8] sm:$0xff]  ;;  %v1081_v26 = vpop.f32.mrf.mxu0  ;;  %v1209_v27 = vpop.f32.mrf.mxu1 }
 0x16c   : > { %v1410_v25 = vld [vmem:[#allocation2 + $0x1d8] sm:$0xff]  ;;  %v2197_v29 = vpack.c.bf16 %v1512_v19, %v1512_v19  ;;  %v1449_v32 = vadd.f32 %v2935_v62, %v1378_v24  ;;  %1313 = vst.msk [vmem:[#allocation2 + $0xe8] sm:$0xff] %vm272_vm1, %v1248_v21  ;;  %1345 = vst.msk [vmem:[#allocation2 + $0x1e8] sm:$0xff] %vm272_vm1, %v1280_v22 }
 0x16d   : > { %v2229_v31 = vpack.c.bf16 %v1544_v20, %v1544_v20  ;;  %v1481_v33 = vadd.f32 %v2935_v62, %v1410_v25  ;;  %v1084_v34 = vpop.f32.mrf.mxu0  ;;  %v1212_v35 = vpop.f32.mrf.mxu1 }
 0x16e   : > { %1833 = vst.msk [vmem:[%s2738_s23 + $0x68] sm:$0xf] %vm1806_vm2, %v2197_v29  ;;  %v1513_v36 = vmax.f32 %v1449_v32, 0.0  ;;  %v1249_v38 = vadd.f32 %v1084_v34, %v367_v23  ;;  %v1281_v39 = vadd.f32 %v1212_v35, %v399_v28 }
 0x16f   : > { %1865 = vst.msk [vmem:[%s2738_s23 + $0xe8] sm:$0xf] %vm1806_vm2, %v2229_v31  ;;  %v1545_v37 = vmax.f32 %v1481_v33, 0.0  ;;  %v1379_v41 = vld [vmem:[#allocation2 + $0xe0] sm:$0xff]  ;;  %v1086_v43 = vpop.f32.mrf.mxu0  ;;  %v1214_v44 = vpop.f32.mrf.mxu1 }
 0x170   : > { %v1411_v42 = vld [vmem:[#allocation2 + $0x1e0] sm:$0xff]  ;;  %v2198_v46 = vpack.c.bf16 %v1513_v36, %v1513_v36  ;;  %v1450_v48 = vadd.f32 %v2935_v62, %v1379_v41  ;;  %1314 = vst.msk [vmem:[#allocation2 + $0xf0] sm:$0xff] %vm272_vm1, %v1249_v38  ;;  %1346 = vst.msk [vmem:[#allocation2 + $0x1f0] sm:$0xff] %vm272_vm1, %v1281_v39 }
 0x171   : > { %v2230_v47 = vpack.c.bf16 %v1545_v37, %v1545_v37  ;;  %v1482_v49 = vadd.f32 %v2935_v62, %v1411_v42  ;;  %v1087_v50 = vpop.f32.mrf.mxu0  ;;  %v1215_v51 = vpop.f32.mrf.mxu1 }
 0x172   : > { %1834 = vst.msk [vmem:[%s2738_s23 + $0x6c] sm:$0xf] %vm1806_vm2, %v2198_v46  ;;  %v1514_v52 = vmax.f32 %v1450_v48, 0.0  ;;  %v1250_v54 = vadd.f32 %v1087_v50, %v368_v40  ;;  %v1282_v55 = vadd.f32 %v1215_v51, %v400_v45 }
 0x173   : > { %1866 = vst.msk [vmem:[%s2738_s23 + $0xec] sm:$0xf] %vm1806_vm2, %v2230_v47  ;;  %v1546_v53 = vmax.f32 %v1482_v49, 0.0  ;;  %v1380_v56 = vld [vmem:[#allocation2 + $0xe8] sm:$0xff]  ;;  %v1089_v30 = vpop.f32.mrf.mxu0  ;;  %v1217_v58 = vpop.f32.mrf.mxu1 }
 0x174   : > { %v1412_v57 = vld [vmem:[#allocation2 + $0x1e8] sm:$0xff]  ;;  %v2199_v59 = vpack.c.bf16 %v1514_v52, %v1514_v52  ;;  %v1451_v61 = vadd.f32 %v2935_v62, %v1380_v56  ;;  %1315 = vst.msk [vmem:[#allocation2 + $0xf8] sm:$0xff] %vm272_vm1, %v1250_v54  ;;  %1347 = vst.msk [vmem:[#allocation2 + $0x1f8] sm:$0xff] %vm272_vm1, %v1282_v55 }
 0x175   : > { %v2231_v60 = vpack.c.bf16 %v1546_v53, %v1546_v53  ;;  %v1483_v63 = vadd.f32 %v2935_v62, %v1412_v57 }
 0x176   : > { %1835 = vst.msk [vmem:[%s2738_s23 + $0x70] sm:$0xf] %vm1806_vm2, %v2199_v59  ;;  %v1515_v0 = vmax.f32 %v1451_v61, 0.0 }
 0x177   : > { %1867 = vst.msk [vmem:[%s2738_s23 + $0xf0] sm:$0xf] %vm1806_vm2, %v2231_v60  ;;  %v1547_v1 = vmax.f32 %v1483_v63, 0.0  ;;  %v1381_v2 = vld [vmem:[#allocation2 + $0xf0] sm:$0xff] }
 0x178   : > { %v1413_v3 = vld [vmem:[#allocation2 + $0x1f0] sm:$0xff]  ;;  %v2200_v4 = vpack.c.bf16 %v1515_v0, %v1515_v0  ;;  %v1452_v6 = vadd.f32 %v2935_v62, %v1381_v2 }
 0x179   : > { %v2232_v5 = vpack.c.bf16 %v1547_v1, %v1547_v1  ;;  %v1484_v7 = vadd.f32 %v2935_v62, %v1413_v3 }
 0x17a   : > { %1836 = vst.msk [vmem:[%s2738_s23 + $0x74] sm:$0xf] %vm1806_vm2, %v2200_v4  ;;  %v1516_v8 = vmax.f32 %v1452_v6, 0.0 }
 0x17b   : > { %1868 = vst.msk [vmem:[%s2738_s23 + $0xf4] sm:$0xf] %vm1806_vm2, %v2232_v5  ;;  %v1548_v9 = vmax.f32 %v1484_v7, 0.0  ;;  %v1382_v10 = vld [vmem:[#allocation2 + $0xf8] sm:$0xff] }
 0x17c   : > { %v1414_v11 = vld [vmem:[#allocation2 + $0x1f8] sm:$0xff]  ;;  %v2201_v12 = vpack.c.bf16 %v1516_v8, %v1516_v8  ;;  %v1453_v14 = vadd.f32 %v2935_v62, %v1382_v10 }
 0x17d   : > { %v2233_v13 = vpack.c.bf16 %v1548_v9, %v1548_v9  ;;  %v1485_v15 = vadd.f32 %v2935_v62, %v1414_v11 }
 0x17e   : > { %1837 = vst.msk [vmem:[%s2738_s23 + $0x78] sm:$0xf] %vm1806_vm2, %v2201_v12  ;;  %v1517_v16 = vmax.f32 %v1453_v14, 0.0 }
 0x17f   : > { %1869 = vst.msk [vmem:[%s2738_s23 + $0xf8] sm:$0xf] %vm1806_vm2, %v2233_v13  ;;  %v1549_v17 = vmax.f32 %v1485_v15, 0.0 }
 0x180   : > { %v2202_v18 = vpack.c.bf16 %v1517_v16, %v1517_v16 }
 0x181   : > { %v2234_v19 = vpack.c.bf16 %v1549_v17, %v1549_v17 }
 0x182   : > { %1838 = vst.msk [vmem:[%s2738_s23 + $0x7c] sm:$0xf] %vm1806_vm2, %v2202_v18 }
 0x183   : > { %1870 = vst.msk [vmem:[%s2738_s23 + $0xfc] sm:$0xf] %vm1806_vm2, %v2234_v19 }
 0x184 PF: > { %s13_s14 = sadd.s32 1, %s2410_s14   ;;  %s3006_s12 = smov %s2406_s13 }
 0x185   : > { %p10_p5 = scmp.ge.s32.totalorder %s13_s14, 6   ;;  %s3007_s13 = smov %s3009_s15 }
 0x187   :  { %12 = sbr.rel (!%p10_p5) target bundleno = 2 (0x2), region = 76 }

</bundles_post_ra>
